<compile_context>
chip_gen: v6e
topology: v6e:2x2x1
jax: 0.10.0
libtpu: 0.0.40
codegen_flags: <defaults>
</compile_context>

<pallas_src>
import functools

import jax
import jax.numpy as jnp
from jax.experimental import pallas as pl
from jax.experimental.pallas import tpu as pltpu

EPS = 1e-5                       # nn.BatchNorm2d default eps
_VMEM_LIMIT = 32 * 1024 * 1024   # explicit scoped-VMEM budget (>= default on all gens)


# ---------------------------------------------------------------------------
# helpers
# ---------------------------------------------------------------------------
def _pick_row_tile(m, cap=512):
    """Largest multiple-of-8 divisor of m that is <= cap, while leaving at
    least 2 tiles (so the leading 'parallel' grid axis can span both cores)."""
    if m >= 16:
        cap = min(cap, m // 2)
    else:
        cap = min(cap, m)
    best = None
    t = 8
    while t <= min(m, cap):
        if m % t == 0:
            best = t
        t += 8
    return best if best is not None else m


def _split_groups(num_tiles, max_groups=2):
    """Split tiles into (groups, tiles_per_group); groups is the 'parallel' axis."""
    g = max_groups if num_tiles % max_groups == 0 else 1
    return g, num_tiles // g


def _fold_bn(s, sq, count, gamma, beta):
    """Fold batch stats + BN affine params into one per-channel scale/shift."""
    mean = s / count
    var = jnp.maximum(sq / count - mean * mean, 0.0)
    scale = gamma * jax.lax.rsqrt(var + EPS)
    shift = beta - mean * scale
    return scale, shift


# ---------------------------------------------------------------------------
# Kernel A/C: [optional fused BN+ReLU] -> 1x1 conv (row-tiled matmul) + BN stats
# ---------------------------------------------------------------------------
def _matmul_stats_body(x_ref, scale_ref, shift_ref, w_ref, y_ref, s_ref, sq_ref,
                       apply_bn_relu):
    x = x_ref[...].astype(jnp.float32)
    if apply_bn_relu:                       # folded BN + ReLU prologue (f32 fma+max)
        x = jnp.maximum(x * scale_ref[...] + shift_ref[...], 0.0)
    # bf16 operands for the MXU, f32 accumulation.
    y = jnp.dot(x.astype(jnp.bfloat16), w_ref[...],
                preferred_element_type=jnp.float32)
    y_ref[...] = y

    # Per-channel sum / sum-of-squares accumulated over the row tiles of this
    # "parallel" group (inner grid axis is "arbitrary"; output block index is
    # constant over it -> resident accumulator).
    @pl.when(pl.program_id(1) == 0)
    def _():
        s_ref[...] = jnp.zeros_like(s_ref)
        sq_ref[...] = jnp.zeros_like(sq_ref)

    s_ref[...] += jnp.sum(y, axis=0, keepdims=True)[None]
    sq_ref[...] += jnp.sum(y * y, axis=0, keepdims=True)[None]


def _make_matmul_stats_kernel(apply_bn_relu):
    if apply_bn_relu:
        def kernel(x_ref, scale_ref, shift_ref, w_ref, y_ref, s_ref, sq_ref):
            _matmul_stats_body(x_ref, scale_ref, shift_ref, w_ref,
                               y_ref, s_ref, sq_ref, True)
    else:
        def kernel(x_ref, w_ref, y_ref, s_ref, sq_ref):
            _matmul_stats_body(x_ref, None, None, w_ref,
                               y_ref, s_ref, sq_ref, False)
    return kernel


def _conv1x1_stats(x2d, w_bf16, scale=None, shift=None, *, row_tile):
    m, k = x2d.shape
    cout = w_bf16.shape[1]
    assert m % row_tile == 0
    groups, tiles = _split_groups(m // row_tile)
    apply_pre = scale is not None

    in_specs = [pl.BlockSpec((row_tile, k), lambda g, i: (g * tiles + i, 0))]
    args = [x2d]
    if apply_pre:
        in_specs += [pl.BlockSpec((1, k), lambda g, i: (0, 0)),
                     pl.BlockSpec((1, k), lambda g, i: (0, 0))]
        args += [scale, shift]
    in_specs += [pl.BlockSpec((k, cout), lambda g, i: (0, 0))]
    args += [w_bf16]

    out_shape = (jax.ShapeDtypeStruct((m, cout), jnp.float32),
                 jax.ShapeDtypeStruct((groups, 1, cout), jnp.float32),
                 jax.ShapeDtypeStruct((groups, 1, cout), jnp.float32))
    out_specs = (pl.BlockSpec((row_tile, cout), lambda g, i: (g * tiles + i, 0)),
                 pl.BlockSpec((1, 1, cout), lambda g, i: (g, 0, 0)),
                 pl.BlockSpec((1, 1, cout), lambda g, i: (g, 0, 0)))

    # TODO(synk): storing y in bf16 would halve intermediate HBM traffic; kept
    # f32 so BN inputs match the exact f32-accumulated conv output.
    y, s, sq = pl.pallas_call(
        _make_matmul_stats_kernel(apply_pre),
        grid=(groups, tiles),
        in_specs=in_specs,
        out_specs=out_specs,
        out_shape=out_shape,
        compiler_params=pltpu.CompilerParams(
            dimension_semantics=("parallel", "arbitrary"),
            vmem_limit_bytes=_VMEM_LIMIT),
        cost_estimate=pl.CostEstimate(
            flops=2 * m * k * cout,
            transcendentals=0,
            bytes_accessed=4 * m * (k + cout) + 2 * k * cout + 8 * groups * cout),
    )(*args)
    return y, s.sum(axis=0), sq.sum(axis=0)


# ---------------------------------------------------------------------------
# Kernel B: fused BN+ReLU -> 3x3 conv (stride 1, pad 1) + BN stats.
# One image per grid step; the 3x3 conv is 9 shifted channel matmuls against a
# zero-padded per-image VMEM scratch.
# ---------------------------------------------------------------------------
def _conv3x3_stats_kernel(y1_ref, scale_ref, shift_ref, w_ref,
                          y2_ref, s_ref, sq_ref, pad_ref):
    _, h, w, p = y1_ref.shape

    # Fused BN1 + ReLU in f32.
    o1 = jnp.maximum(y1_ref[...] * scale_ref[...] + shift_ref[...], 0.0)

    # Zero only the 1-pixel halo ring, and only at the first inner-grid step of
    # each 'parallel' group: the scratch persists across grid iterations and
    # the halo is never overwritten (only the interior is rewritten per image).
    @pl.when(pl.program_id(1) == 0)
    def _():
        pad_ref[:, 0:1, :, :] = jnp.zeros((1, 1, w + 2, p), pad_ref.dtype)
        pad_ref[:, h + 1:h + 2, :, :] = jnp.zeros((1, 1, w + 2, p), pad_ref.dtype)
        pad_ref[:, 1:h + 1, 0:1, :] = jnp.zeros((1, h, 1, p), pad_ref.dtype)
        pad_ref[:, 1:h + 1, w + 1:w + 2, :] = jnp.zeros((1, h, 1, p), pad_ref.dtype)

    pad_ref[:, 1:h + 1, 1:w + 1, :] = o1

    # 9 taps: one channel matmul per (dy, dx) shift; the accumulator is
    # initialized from the first tap (no zeros+add pass).  Operands go to the
    # MXU in bf16 with f32 accumulation.
    acc = None
    for dy in range(3):
        for dx in range(3):
            patch = pad_ref[:, dy:dy + h, dx:dx + w, :].reshape(h * w, p)
            tap = jnp.dot(patch.astype(jnp.bfloat16), w_ref[dy, dx],
                          preferred_element_type=jnp.float32)
            acc = tap if acc is None else acc + tap

    y2_ref[...] = acc.reshape(1, h, w, p)

    @pl.when(pl.program_id(1) == 0)
    def _():
        s_ref[...] = jnp.zeros_like(s_ref)
        sq_ref[...] = jnp.zeros_like(sq_ref)

    s_ref[...] += jnp.sum(acc, axis=0, keepdims=True)[None]
    sq_ref[...] += jnp.sum(acc * acc, axis=0, keepdims=True)[None]


def _conv3x3_bn_stats(y1, scale, shift, w2_bf16):
    n, h, w, p = y1.shape
    groups, per_group = _split_groups(n)

    in_specs = [pl.BlockSpec((1, h, w, p), lambda g, i: (g * per_group + i, 0, 0, 0)),
                pl.BlockSpec((1, p), lambda g, i: (0, 0)),
                pl.BlockSpec((1, p), lambda g, i: (0, 0)),
                pl.BlockSpec((3, 3, p, p), lambda g, i: (0, 0, 0, 0))]
    out_shape = (jax.ShapeDtypeStruct((n, h, w, p), jnp.float32),
                 jax.ShapeDtypeStruct((groups, 1, p), jnp.float32),
                 jax.ShapeDtypeStruct((groups, 1, p), jnp.float32))
    out_specs = (pl.BlockSpec((1, h, w, p), lambda g, i: (g * per_group + i, 0, 0, 0)),
                 pl.BlockSpec((1, 1, p), lambda g, i: (g, 0, 0)),
                 pl.BlockSpec((1, 1, p), lambda g, i: (g, 0, 0)))

    # TODO(synk): for very large per-image H*W*planes, tile conv3x3 over H-row
    # blocks with a 1-row halo instead of whole images.
    # TODO(synk): a bf16 padded scratch would halve its footprint (matters on
    # v7x's 64 MiB VMEM); kept f32 because offset sublane slicing of packed
    # bf16 is the riskier lowering path — taps are cast to bf16 at the MXU.
    y2, s, sq = pl.pallas_call(
        _conv3x3_stats_kernel,
        grid=(groups, per_group),
        in_specs=in_specs,
        out_specs=out_specs,
        out_shape=out_shape,
        scratch_shapes=[pltpu.VMEM((1, h + 2, w + 2, p), jnp.float32)],
        compiler_params=pltpu.CompilerParams(
            dimension_semantics=("parallel", "arbitrary"),
            vmem_limit_bytes=_VMEM_LIMIT),
        cost_estimate=pl.CostEstimate(
            flops=2 * n * h * w * 9 * p * p,
            transcendentals=0,
            bytes_accessed=8 * n * h * w * p + 2 * 9 * p * p + 8 * groups * p),
    )(y1, scale, shift, w2_bf16)
    return y2, s.sum(axis=0), sq.sum(axis=0)


# ---------------------------------------------------------------------------
# Kernel D: BN3 (folded scale/shift) + residual add + ReLU, row-tiled.
# ---------------------------------------------------------------------------
def _bn_add_relu_kernel(y_ref, scale_ref, shift_ref, res_ref, out_ref):
    out = y_ref[...] * scale_ref[...] + shift_ref[...] + res_ref[...].astype(jnp.float32)
    out_ref[...] = jnp.maximum(out, 0.0).astype(out_ref.dtype)


def _bn_add_relu(y3, scale, shift, residual, out_dtype, *, row_tile):
    m, c = y3.shape
    assert m % row_tile == 0
    tiles = m // row_tile
    in_specs = [pl.BlockSpec((row_tile, c), lambda i: (i, 0)),
                pl.BlockSpec((1, c), lambda i: (0, 0)),
                pl.BlockSpec((1, c), lambda i: (0, 0)),
                pl.BlockSpec((row_tile, c), lambda i: (i, 0))]
    return pl.pallas_call(
        _bn_add_relu_kernel,
        grid=(tiles,),
        in_specs=in_specs,
        out_specs=pl.BlockSpec((row_tile, c), lambda i: (i, 0)),
        out_shape=jax.ShapeDtypeStruct((m, c), out_dtype),
        compiler_params=pltpu.CompilerParams(
            dimension_semantics=("parallel",),
            vmem_limit_bytes=_VMEM_LIMIT),
        cost_estimate=pl.CostEstimate(
            flops=4 * m * c, transcendentals=0, bytes_accessed=12 * m * c),
    )(y3, scale, shift, residual)


# ---------------------------------------------------------------------------
# Full Bottleneck forward (NHWC; a PyTorch NCHW input would be transposed).
# ---------------------------------------------------------------------------
def bottleneck_forward(x, params, *, row_tile=None):
    n, h, w, cin = x.shape
    planes = params["w1"].shape[1]
    cout = params["w3"].shape[1]
    assert cin == cout, "downsample=None / stride=1 requires inplanes == planes*4"
    m = n * h * w
    if row_tile is None:
        row_tile = _pick_row_tile(m)

    # Weights pre-cast once to bf16 for the MXU (accumulation stays f32).
    w1 = params["w1"].astype(jnp.bfloat16)
    w2 = params["w2"].astype(jnp.bfloat16)
    w3 = params["w3"].astype(jnp.bfloat16)

    x2d = x.reshape(m, cin)

    # conv1 (1x1) + BN1 batch stats.
    y1, s1, sq1 = _conv1x1_stats(x2d, w1, row_tile=row_tile)
    sc1, sh1 = _fold_bn(s1, sq1, m, params["g1"], params["b1"])

    # BN1+ReLU fused into conv2 (3x3) + BN2 batch stats.
    y2, s2, sq2 = _conv3x3_bn_stats(y1.reshape(n, h, w, planes), sc1, sh1, w2)
    sc2, sh2 = _fold_bn(s2, sq2, m, params["g2"], params["b2"])

    # BN2+ReLU fused into conv3 (1x1 expand) + BN3 batch stats.
    y3, s3, sq3 = _conv1x1_stats(y2.reshape(m, planes), w3, sc2, sh2,
                                 row_tile=row_tile)
    sc3, sh3 = _fold_bn(s3, sq3, m, params["g3"], params["b3"])

    # BN3 + residual + ReLU (residual re-read tile-by-tile, not kept live).
    out2d = _bn_add_relu(y3, sc3, sh3, x2d, x.dtype, row_tile=row_tile)
    return out2d.reshape(n, h, w, cout)


# ---------------------------------------------------------------------------
# Pure-JAX references for validation.
# ---------------------------------------------------------------------------
def bottleneck_ref(x, params, matmul_dtype=jnp.float32):
    """NHWC reference.  matmul_dtype=bfloat16 matches the kernel's MXU operand
    precision (f32 accumulation); float32 is the exact module math."""
    dn = ("NHWC", "HWIO", "NHWC")

    def conv(inp, wt):
        return jax.lax.conv_general_dilated(
            inp.astype(matmul_dtype), wt.astype(matmul_dtype), (1, 1), "SAME",
            dimension_numbers=dn, preferred_element_type=jnp.float32)

    def bn(y, g, b):
        mean = y.mean(axis=(0, 1, 2), keepdims=True)
        var = ((y - mean) ** 2).mean(axis=(0, 1, 2), keepdims=True)
        return (y - mean) * jax.lax.rsqrt(var + EPS) * g.reshape(1, 1, 1, -1) \
            + b.reshape(1, 1, 1, -1)

    w1 = params["w1"].reshape(1, 1, *params["w1"].shape)
    w3 = params["w3"].reshape(1, 1, *params["w3"].shape)
    o = jax.nn.relu(bn(conv(x, w1), params["g1"], params["b1"]))
    o = jax.nn.relu(bn(conv(o, params["w2"]), params["g2"], params["b2"]))
    o = bn(conv(o, w3), params["g3"], params["b3"])
    return jax.nn.relu(o + x)


if __name__ == "__main__":
    key = jax.random.PRNGKey(0)
    ks = jax.random.split(key, 4)

    N, H, W = 2, 8, 8
    planes = 32
    expansion = 4
    inplanes = planes * expansion    # 128: residual add requires Cin == Cout
    cout = planes * expansion        # 128 == lane width -> dense vregs for 1x1 convs

    def affine(c, gscale, bscale):
        return (1.0 + gscale * jnp.arange(c, dtype=jnp.float32).reshape(1, c),
                bscale * jnp.arange(c, dtype=jnp.float32).reshape(1, c))

    g1, b1 = affine(planes, 0.02, 0.01)
    g2, b2 = affine(planes, 0.01, -0.005)
    g3, b3 = affine(cout, 0.004, 0.002)

    params = dict(
        w1=0.1 * jax.random.normal(ks[0], (inplanes, planes), jnp.float32),
        g1=g1, b1=b1,
        w2=0.1 * jax.random.normal(ks[1], (3, 3, planes, planes), jnp.float32),
        g2=g2, b2=b2,
        w3=0.1 * jax.random.normal(ks[2], (planes, cout), jnp.float32),
        g3=g3, b3=b3,
    )

    x = jax.random.normal(ks[3], (N, H, W, inplanes), jnp.float32)

    # row_tile=None -> heuristic picks the largest multiple-of-8 tile that
    # still leaves >=2 tiles for the 'parallel' axis (here: 64 rows/tile).
    fwd = jax.jit(functools.partial(bottleneck_forward, row_tile=None))
    out = fwd(x, params)
    jax.block_until_ready(out)
    assert out.shape == (N, H, W, cout)

    # Matched-precision reference: same bf16 matmul operands / f32 accumulation
    # as the kernel, so only accumulation-order / rounding noise remains.
    ref_bf16 = bottleneck_ref(x, params, matmul_dtype=jnp.bfloat16)
    assert jnp.allclose(out, ref_bf16, atol=5e-3, rtol=5e-3), \
        f"max abs err vs matched-precision ref: {jnp.max(jnp.abs(out - ref_bf16))}"

    # Loose sanity bound vs the exact f32 module math (difference is the bf16
    # operand rounding inherent to running the convs on the MXU in bf16).
    ref_f32 = bottleneck_ref(x, params, matmul_dtype=jnp.float32)
    assert jnp.allclose(out, ref_f32, atol=0.25, rtol=0.0), \
        f"max abs err vs f32 ref: {jnp.max(jnp.abs(out - ref_f32))}"

    print("KERNEL_OK")
</pallas_src>

<mosaic_0001>
module attributes {stable_mosaic.version = 11 : i64} {
  func.func @kernel(%arg0: i32, %arg1: i32, %arg2: memref<64x128xf32, #tpu.memory_space<vmem>>, %arg3: memref<128x32xbf16, #tpu.memory_space<vmem>>, %arg4: memref<64x32xf32, #tpu.memory_space<vmem>>, %arg5: memref<1x1x32xf32, #tpu.memory_space<vmem>>, %arg6: memref<1x1x32xf32, #tpu.memory_space<vmem>>) attributes {dimension_semantics = [#tpu.dimension_semantics<parallel>, #tpu.dimension_semantics<arbitrary>], iteration_bounds = array<i64: 2, 1>, scalar_prefetch = 0 : i64, scratch_operands = 0 : i64, tpu.core_type = #tpu.core_type<tc>, window_params = [{transform_indices = @transform_0, window_bounds = array<i64: 64, 128>}, {pipeline_mode = #tpu.pipeline_mode<synchronous>, transform_indices = @transform_1, window_bounds = array<i64: 128, 32>}, {transform_indices = @transform_2, window_bounds = array<i64: 64, 32>}, {transform_indices = @transform_3, window_bounds = array<i64: 1, 1, 32>}, {transform_indices = @transform_4, window_bounds = array<i64: 1, 1, 32>}]} {
    %c0 = arith.constant 0 : index
    %c0_0 = arith.constant 0 : index
    %0 = vector.load %arg2[%c0, %c0_0] : memref<64x128xf32, #tpu.memory_space<vmem>>, vector<64x128xf32>
    %1 = arith.truncf %0 : vector<64x128xf32> to vector<64x128xbf16>
    %c0_1 = arith.constant 0 : index
    %c0_2 = arith.constant 0 : index
    %2 = vector.load %arg3[%c0_1, %c0_2] : memref<128x32xbf16, #tpu.memory_space<vmem>>, vector<128x32xbf16>
    %cst = arith.constant dense<0.000000e+00> : vector<64x32xf32>
    %3 = tpu.matmul %1, %2, %cst {dimension_numbers = #tpu.dot_dimension_numbers<[1], [0], [0], [1], [0, 0, 1, 1], [], []>} : vector<64x128xbf16>, vector<128x32xbf16>, vector<64x32xf32> -> vector<64x32xf32>
    %c0_3 = arith.constant 0 : index
    %c0_4 = arith.constant 0 : index
    %4 = vector.load %arg4[%c0_3, %c0_4] : memref<64x32xf32, #tpu.memory_space<vmem>>, vector<64x32xf32>
    tpu.vector_store %arg4[%c0_3, %c0_4], %3 {strides = array<i32>} : memref<64x32xf32, #tpu.memory_space<vmem>>, vector<64x32xf32>,
    %c0_i32 = arith.constant 0 : i32
    %5 = arith.cmpi eq, %arg1, %c0_i32 : i32
    %6 = arith.extui %5 : i1 to i32
    %c0_i32_5 = arith.constant 0 : i32
    %7 = arith.cmpi ne, %6, %c0_i32_5 : i32
    scf.if %7 {
      %cst_20 = arith.constant 0.000000e+00 : f32
      %21 = vector.broadcast %cst_20 : f32 to vector<1x1x32xf32>
      %c0_21 = arith.constant 0 : index
      %c0_22 = arith.constant 0 : index
      %c0_23 = arith.constant 0 : index
      %22 = vector.load %arg5[%c0_21, %c0_22, %c0_23] : memref<1x1x32xf32, #tpu.memory_space<vmem>>, vector<1x1x32xf32>
      tpu.vector_store %arg5[%c0_21, %c0_22, %c0_23], %21 {strides = array<i32>} : memref<1x1x32xf32, #tpu.memory_space<vmem>>, vector<1x1x32xf32>,
      %cst_24 = arith.constant 0.000000e+00 : f32
      %23 = vector.broadcast %cst_24 : f32 to vector<1x1x32xf32>
      %c0_25 = arith.constant 0 : index
      %c0_26 = arith.constant 0 : index
      %c0_27 = arith.constant 0 : index
      %24 = vector.load %arg6[%c0_25, %c0_26, %c0_27] : memref<1x1x32xf32, #tpu.memory_space<vmem>>, vector<1x1x32xf32>
      tpu.vector_store %arg6[%c0_25, %c0_26, %c0_27], %23 {strides = array<i32>} : memref<1x1x32xf32, #tpu.memory_space<vmem>>, vector<1x1x32xf32>,
    } else {
    }
    %c0_6 = arith.constant 0 : index
    %c0_7 = arith.constant 0 : index
    %c0_8 = arith.constant 0 : index
    %8 = vector.load %arg5[%c0_6, %c0_7, %c0_8] : memref<1x1x32xf32, #tpu.memory_space<vmem>>, vector<1x1x32xf32>
    %cst_9 = arith.constant dense<0.000000e+00> : vector<32xf32>
    %9 = vector.multi_reduction <add>, %3, %cst_9 [0] : vector<64x32xf32> to vector<32xf32>
    %10 = vector.shape_cast %9 : vector<32xf32> to vector<1x32xf32>
    %11 = vector.shape_cast %10 : vector<1x32xf32> to vector<1x1x32xf32>
    %12 = arith.addf %8, %11 : vector<1x1x32xf32>
    %c0_10 = arith.constant 0 : index
    %c0_11 = arith.constant 0 : index
    %c0_12 = arith.constant 0 : index
    %13 = vector.load %arg5[%c0_10, %c0_11, %c0_12] : memref<1x1x32xf32, #tpu.memory_space<vmem>>, vector<1x1x32xf32>
    tpu.vector_store %arg5[%c0_10, %c0_11, %c0_12], %12 {strides = array<i32>} : memref<1x1x32xf32, #tpu.memory_space<vmem>>, vector<1x1x32xf32>,
    %c0_13 = arith.constant 0 : index
    %c0_14 = arith.constant 0 : index
    %c0_15 = arith.constant 0 : index
    %14 = vector.load %arg6[%c0_13, %c0_14, %c0_15] : memref<1x1x32xf32, #tpu.memory_space<vmem>>, vector<1x1x32xf32>
    %15 = arith.mulf %3, %3 : vector<64x32xf32>
    %cst_16 = arith.constant dense<0.000000e+00> : vector<32xf32>
    %16 = vector.multi_reduction <add>, %15, %cst_16 [0] : vector<64x32xf32> to vector<32xf32>
    %17 = vector.shape_cast %16 : vector<32xf32> to vector<1x32xf32>
    %18 = vector.shape_cast %17 : vector<1x32xf32> to vector<1x1x32xf32>
    %19 = arith.addf %14, %18 : vector<1x1x32xf32>
    %c0_17 = arith.constant 0 : index
    %c0_18 = arith.constant 0 : index
    %c0_19 = arith.constant 0 : index
    %20 = vector.load %arg6[%c0_17, %c0_18, %c0_19] : memref<1x1x32xf32, #tpu.memory_space<vmem>>, vector<1x1x32xf32>
    tpu.vector_store %arg6[%c0_17, %c0_18, %c0_19], %19 {strides = array<i32>} : memref<1x1x32xf32, #tpu.memory_space<vmem>>, vector<1x1x32xf32>,
    return
  }
  func.func @transform_0(%arg0: i32, %arg1: i32) -> (i32, i32) {
    %c1_i32 = arith.constant 1 : i32
    %0 = arith.muli %arg0, %c1_i32 : i32
    %1 = arith.addi %0, %arg1 : i32
    %c0_i32 = arith.constant 0 : i32
    %c0_i32_0 = arith.constant 0 : i32
    return %1, %c0_i32 : i32, i32
  }
  func.func @transform_1(%arg0: i32, %arg1: i32) -> (i32, i32) {
    %c0_i32 = arith.constant 0 : i32
    %c0_i32_0 = arith.constant 0 : i32
    %c0_i32_1 = arith.constant 0 : i32
    return %c0_i32, %c0_i32_0 : i32, i32
  }
  func.func @transform_2(%arg0: i32, %arg1: i32) -> (i32, i32) {
    %c1_i32 = arith.constant 1 : i32
    %0 = arith.muli %arg0, %c1_i32 : i32
    %1 = arith.addi %0, %arg1 : i32
    %c0_i32 = arith.constant 0 : i32
    %c0_i32_0 = arith.constant 0 : i32
    return %1, %c0_i32 : i32, i32
  }
  func.func @transform_3(%arg0: i32, %arg1: i32) -> (i32, i32, i32) {
    %c0_i32 = arith.constant 0 : i32
    %c0_i32_0 = arith.constant 0 : i32
    %c0_i32_1 = arith.constant 0 : i32
    return %arg0, %c0_i32, %c0_i32_0 : i32, i32, i32
  }
  func.func @transform_4(%arg0: i32, %arg1: i32) -> (i32, i32, i32) {
    %c0_i32 = arith.constant 0 : i32
    %c0_i32_0 = arith.constant 0 : i32
    %c0_i32_1 = arith.constant 0 : i32
    return %arg0, %c0_i32, %c0_i32_0 : i32, i32, i32
  }
}

module attributes {stable_mosaic.version = 11 : i64} {
  func.func @_conv3x3_stats_kernel(%arg0: i32, %arg1: i32, %arg2: memref<1x8x8x32xf32, #tpu.memory_space<vmem>>, %arg3: memref<1x32xf32, #tpu.memory_space<vmem>>, %arg4: memref<1x32xf32, #tpu.memory_space<vmem>>, %arg5: memref<3x3x32x32xbf16, #tpu.memory_space<vmem>>, %arg6: memref<1x8x8x32xf32, #tpu.memory_space<vmem>>, %arg7: memref<1x1x32xf32, #tpu.memory_space<vmem>>, %arg8: memref<1x1x32xf32, #tpu.memory_space<vmem>>, %arg9: memref<1x10x10x32xf32, #tpu.memory_space<vmem>>) attributes {dimension_semantics = [#tpu.dimension_semantics<parallel>, #tpu.dimension_semantics<arbitrary>], iteration_bounds = array<i64: 2, 1>, scalar_prefetch = 0 : i64, scratch_operands = 1 : i64, tpu.core_type = #tpu.core_type<tc>, window_params = [{transform_indices = @transform_0, window_bounds = array<i64: 1, 8, 8, 32>}, {pipeline_mode = #tpu.pipeline_mode<synchronous>, transform_indices = @transform_1, window_bounds = array<i64: 1, 32>}, {pipeline_mode = #tpu.pipeline_mode<synchronous>, transform_indices = @transform_2, window_bounds = array<i64: 1, 32>}, {pipeline_mode = #tpu.pipeline_mode<synchronous>, transform_indices = @transform_3, window_bounds = array<i64: 3, 3, 32, 32>}, {transform_indices = @transform_4, window_bounds = array<i64: 1, 8, 8, 32>}, {transform_indices = @transform_5, window_bounds = array<i64: 1, 1, 32>}, {transform_indices = @transform_6, window_bounds = array<i64: 1, 1, 32>}]} {
    %c0 = arith.constant 0 : index
    %c0_0 = arith.constant 0 : index
    %c0_1 = arith.constant 0 : index
    %c0_2 = arith.constant 0 : index
    %0 = vector.load %arg2[%c0, %c0_0, %c0_1, %c0_2] : memref<1x8x8x32xf32, #tpu.memory_space<vmem>>, vector<1x8x8x32xf32>
    %c0_3 = arith.constant 0 : index
    %c0_4 = arith.constant 0 : index
    %1 = vector.load %arg3[%c0_3, %c0_4] : memref<1x32xf32, #tpu.memory_space<vmem>>, vector<1x32xf32>
    %2 = vector.shape_cast %1 : vector<1x32xf32> to vector<1x1x1x32xf32>
    %3 = vector.broadcast %2 : vector<1x1x1x32xf32> to vector<1x8x8x32xf32>
    %4 = arith.mulf %0, %3 : vector<1x8x8x32xf32>
    %c0_5 = arith.constant 0 : index
    %c0_6 = arith.constant 0 : index
    %5 = vector.load %arg4[%c0_5, %c0_6] : memref<1x32xf32, #tpu.memory_space<vmem>>, vector<1x32xf32>
    %6 = vector.shape_cast %5 : vector<1x32xf32> to vector<1x1x1x32xf32>
    %7 = vector.broadcast %6 : vector<1x1x1x32xf32> to vector<1x8x8x32xf32>
    %8 = arith.addf %4, %7 : vector<1x8x8x32xf32>
    %cst = arith.constant 0.000000e+00 : f32
    %9 = vector.broadcast %cst : f32 to vector<1x8x8x32xf32>
    %10 = arith.maximumf %8, %9 : vector<1x8x8x32xf32>
    %c0_i32 = arith.constant 0 : i32
    %11 = arith.cmpi eq, %arg1, %c0_i32 : i32
    %12 = arith.extui %11 : i1 to i32
    %c0_i32_7 = arith.constant 0 : i32
    %13 = arith.cmpi ne, %12, %c0_i32_7 : i32
    scf.if %13 {
      %cst_111 = arith.constant 0.000000e+00 : f32
      %95 = vector.broadcast %cst_111 : f32 to vector<1x1x10x32xf32>
      %c0_112 = arith.constant 0 : index
      %c0_113 = arith.constant 0 : index
      %c0_114 = arith.constant 0 : index
      %c0_115 = arith.constant 0 : index
      %96 = vector.load %arg9[%c0_112, %c0_113, %c0_114, %c0_115] : memref<1x10x10x32xf32, #tpu.memory_space<vmem>>, vector<1x1x10x32xf32>
      tpu.vector_store %arg9[%c0_112, %c0_113, %c0_114, %c0_115], %95 {strides = array<i32>} : memref<1x10x10x32xf32, #tpu.memory_space<vmem>>, vector<1x1x10x32xf32>,
      %cst_116 = arith.constant 0.000000e+00 : f32
      %97 = vector.broadcast %cst_116 : f32 to vector<1x1x10x32xf32>
      %c0_117 = arith.constant 0 : index
      %c9 = arith.constant 9 : index
      %c0_118 = arith.constant 0 : index
      %c0_119 = arith.constant 0 : index
      %98 = vector.load %arg9[%c0_117, %c9, %c0_118, %c0_119] : memref<1x10x10x32xf32, #tpu.memory_space<vmem>>, vector<1x1x10x32xf32>
      tpu.vector_store %arg9[%c0_117, %c9, %c0_118, %c0_119], %97 {strides = array<i32>} : memref<1x10x10x32xf32, #tpu.memory_space<vmem>>, vector<1x1x10x32xf32>,
      %cst_120 = arith.constant 0.000000e+00 : f32
      %99 = vector.broadcast %cst_120 : f32 to vector<1x8x1x32xf32>
      %c0_121 = arith.constant 0 : index
      %c1_122 = arith.constant 1 : index
      %c0_123 = arith.constant 0 : index
      %c0_124 = arith.constant 0 : index
      %100 = vector.load %arg9[%c0_121, %c1_122, %c0_123, %c0_124] : memref<1x10x10x32xf32, #tpu.memory_space<vmem>>, vector<1x8x1x32xf32>
      tpu.vector_store %arg9[%c0_121, %c1_122, %c0_123, %c0_124], %99 {strides = array<i32>} : memref<1x10x10x32xf32, #tpu.memory_space<vmem>>, vector<1x8x1x32xf32>,
      %cst_125 = arith.constant 0.000000e+00 : f32
      %101 = vector.broadcast %cst_125 : f32 to vector<1x8x1x32xf32>
      %c0_126 = arith.constant 0 : index
      %c1_127 = arith.constant 1 : index
      %c9_128 = arith.constant 9 : index
      %c0_129 = arith.constant 0 : index
      %102 = vector.load %arg9[%c0_126, %c1_127, %c9_128, %c0_129] : memref<1x10x10x32xf32, #tpu.memory_space<vmem>>, vector<1x8x1x32xf32>
      tpu.vector_store %arg9[%c0_126, %c1_127, %c9_128, %c0_129], %101 {strides = array<i32>} : memref<1x10x10x32xf32, #tpu.memory_space<vmem>>, vector<1x8x1x32xf32>,
    } else {
    }
    %c0_8 = arith.constant 0 : index
    %c1 = arith.constant 1 : index
    %c1_9 = arith.constant 1 : index
    %c0_10 = arith.constant 0 : index
    %14 = vector.load %arg9[%c0_8, %c1, %c1_9, %c0_10] : memref<1x10x10x32xf32, #tpu.memory_space<vmem>>, vector<1x8x8x32xf32>
    tpu.vector_store %arg9[%c0_8, %c1, %c1_9, %c0_10], %10 {strides = array<i32>} : memref<1x10x10x32xf32, #tpu.memory_space<vmem>>, vector<1x8x8x32xf32>,
    %c0_11 = arith.constant 0 : index
    %c0_12 = arith.constant 0 : index
    %c0_13 = arith.constant 0 : index
    %c0_14 = arith.constant 0 : index
    %15 = vector.load %arg9[%c0_11, %c0_12, %c0_13, %c0_14] : memref<1x10x10x32xf32, #tpu.memory_space<vmem>>, vector<1x8x8x32xf32>
    %16 = vector.shape_cast %15 : vector<1x8x8x32xf32> to vector<64x32xf32>
    %17 = arith.truncf %16 : vector<64x32xf32> to vector<64x32xbf16>
    %c0_15 = arith.constant 0 : index
    %c0_16 = arith.constant 0 : index
    %c0_17 = arith.constant 0 : index
    %c0_18 = arith.constant 0 : index
    %18 = vector.load %arg5[%c0_15, %c0_16, %c0_17, %c0_18] : memref<3x3x32x32xbf16, #tpu.memory_space<vmem>>, vector<1x1x32x32xbf16>
    %19 = vector.shape_cast %18 : vector<1x1x32x32xbf16> to vector<32x32xbf16>
    %cst_19 = arith.constant dense<0.000000e+00> : vector<64x32xf32>
    %20 = tpu.matmul %17, %19, %cst_19 {dimension_numbers = #tpu.dot_dimension_numbers<[1], [0], [0], [1], [0, 0, 1, 1], [], []>} : vector<64x32xbf16>, vector<32x32xbf16>, vector<64x32xf32> -> vector<64x32xf32>
    %c0_20 = arith.constant 0 : index
    %c0_21 = arith.constant 0 : index
    %c1_22 = arith.constant 1 : index
    %c0_23 = arith.constant 0 : index
    %21 = vector.load %arg9[%c0_20, %c0_21, %c1_22, %c0_23] : memref<1x10x10x32xf32, #tpu.memory_space<vmem>>, vector<1x8x8x32xf32>
    %22 = vector.shape_cast %21 : vector<1x8x8x32xf32> to vector<64x32xf32>
    %23 = arith.truncf %22 : vector<64x32xf32> to vector<64x32xbf16>
    %c0_24 = arith.constant 0 : index
    %c1_25 = arith.constant 1 : index
    %c0_26 = arith.constant 0 : index
    %c0_27 = arith.constant 0 : index
    %24 = vector.load %arg5[%c0_24, %c1_25, %c0_26, %c0_27] : memref<3x3x32x32xbf16, #tpu.memory_space<vmem>>, vector<1x1x32x32xbf16>
    %25 = vector.shape_cast %24 : vector<1x1x32x32xbf16> to vector<32x32xbf16>
    %cst_28 = arith.constant dense<0.000000e+00> : vector<64x32xf32>
    %26 = tpu.matmul %23, %25, %cst_28 {dimension_numbers = #tpu.dot_dimension_numbers<[1], [0], [0], [1], [0, 0, 1, 1], [], []>} : vector<64x32xbf16>, vector<32x32xbf16>, vector<64x32xf32> -> vector<64x32xf32>
    %27 = arith.addf %20, %26 : vector<64x32xf32>
    %c0_29 = arith.constant 0 : index
    %c0_30 = arith.constant 0 : index
    %c2 = arith.constant 2 : index
    %c0_31 = arith.constant 0 : index
    %28 = vector.load %arg9[%c0_29, %c0_30, %c2, %c0_31] : memref<1x10x10x32xf32, #tpu.memory_space<vmem>>, vector<1x8x8x32xf32>
    %29 = vector.shape_cast %28 : vector<1x8x8x32xf32> to vector<64x32xf32>
    %30 = arith.truncf %29 : vector<64x32xf32> to vector<64x32xbf16>
    %c0_32 = arith.constant 0 : index
    %c2_33 = arith.constant 2 : index
    %c0_34 = arith.constant 0 : index
    %c0_35 = arith.constant 0 : index
    %31 = vector.load %arg5[%c0_32, %c2_33, %c0_34, %c0_35] : memref<3x3x32x32xbf16, #tpu.memory_space<vmem>>, vector<1x1x32x32xbf16>
    %32 = vector.shape_cast %31 : vector<1x1x32x32xbf16> to vector<32x32xbf16>
    %cst_36 = arith.constant dense<0.000000e+00> : vector<64x32xf32>
    %33 = tpu.matmul %30, %32, %cst_36 {dimension_numbers = #tpu.dot_dimension_numbers<[1], [0], [0], [1], [0, 0, 1, 1], [], []>} : vector<64x32xbf16>, vector<32x32xbf16>, vector<64x32xf32> -> vector<64x32xf32>
    %34 = arith.addf %27, %33 : vector<64x32xf32>
    %c0_37 = arith.constant 0 : index
    %c1_38 = arith.constant 1 : index
    %c0_39 = arith.constant 0 : index
    %c0_40 = arith.constant 0 : index
    %35 = vector.load %arg9[%c0_37, %c1_38, %c0_39, %c0_40] : memref<1x10x10x32xf32, #tpu.memory_space<vmem>>, vector<1x8x8x32xf32>
    %36 = vector.shape_cast %35 : vector<1x8x8x32xf32> to vector<64x32xf32>
    %37 = arith.truncf %36 : vector<64x32xf32> to vector<64x32xbf16>
    %c1_41 = arith.constant 1 : index
    %c0_42 = arith.constant 0 : index
    %c0_43 = arith.constant 0 : index
    %c0_44 = arith.constant 0 : index
    %38 = vector.load %arg5[%c1_41, %c0_42, %c0_43, %c0_44] : memref<3x3x32x32xbf16, #tpu.memory_space<vmem>>, vector<1x1x32x32xbf16>
    %39 = vector.shape_cast %38 : vector<1x1x32x32xbf16> to vector<32x32xbf16>
    %cst_45 = arith.constant dense<0.000000e+00> : vector<64x32xf32>
    %40 = tpu.matmul %37, %39, %cst_45 {dimension_numbers = #tpu.dot_dimension_numbers<[1], [0], [0], [1], [0, 0, 1, 1], [], []>} : vector<64x32xbf16>, vector<32x32xbf16>, vector<64x32xf32> -> vector<64x32xf32>
    %41 = arith.addf %34, %40 : vector<64x32xf32>
    %c0_46 = arith.constant 0 : index
    %c1_47 = arith.constant 1 : index
    %c1_48 = arith.constant 1 : index
    %c0_49 = arith.constant 0 : index
    %42 = vector.load %arg9[%c0_46, %c1_47, %c1_48, %c0_49] : memref<1x10x10x32xf32, #tpu.memory_space<vmem>>, vector<1x8x8x32xf32>
    %43 = vector.shape_cast %42 : vector<1x8x8x32xf32> to vector<64x32xf32>
    %44 = arith.truncf %43 : vector<64x32xf32> to vector<64x32xbf16>
    %c1_50 = arith.constant 1 : index
    %c1_51 = arith.constant 1 : index
    %c0_52 = arith.constant 0 : index
    %c0_53 = arith.constant 0 : index
    %45 = vector.load %arg5[%c1_50, %c1_51, %c0_52, %c0_53] : memref<3x3x32x32xbf16, #tpu.memory_space<vmem>>, vector<1x1x32x32xbf16>
    %46 = vector.shape_cast %45 : vector<1x1x32x32xbf16> to vector<32x32xbf16>
    %cst_54 = arith.constant dense<0.000000e+00> : vector<64x32xf32>
    %47 = tpu.matmul %44, %46, %cst_54 {dimension_numbers = #tpu.dot_dimension_numbers<[1], [0], [0], [1], [0, 0, 1, 1], [], []>} : vector<64x32xbf16>, vector<32x32xbf16>, vector<64x32xf32> -> vector<64x32xf32>
    %48 = arith.addf %41, %47 : vector<64x32xf32>
    %c0_55 = arith.constant 0 : index
    %c1_56 = arith.constant 1 : index
    %c2_57 = arith.constant 2 : index
    %c0_58 = arith.constant 0 : index
    %49 = vector.load %arg9[%c0_55, %c1_56, %c2_57, %c0_58] : memref<1x10x10x32xf32, #tpu.memory_space<vmem>>, vector<1x8x8x32xf32>
    %50 = vector.shape_cast %49 : vector<1x8x8x32xf32> to vector<64x32xf32>
    %51 = arith.truncf %50 : vector<64x32xf32> to vector<64x32xbf16>
    %c1_59 = arith.constant 1 : index
    %c2_60 = arith.constant 2 : index
    %c0_61 = arith.constant 0 : index
    %c0_62 = arith.constant 0 : index
    %52 = vector.load %arg5[%c1_59, %c2_60, %c0_61, %c0_62] : memref<3x3x32x32xbf16, #tpu.memory_space<vmem>>, vector<1x1x32x32xbf16>
    %53 = vector.shape_cast %52 : vector<1x1x32x32xbf16> to vector<32x32xbf16>
    %cst_63 = arith.constant dense<0.000000e+00> : vector<64x32xf32>
    %54 = tpu.matmul %51, %53, %cst_63 {dimension_numbers = #tpu.dot_dimension_numbers<[1], [0], [0], [1], [0, 0, 1, 1], [], []>} : vector<64x32xbf16>, vector<32x32xbf16>, vector<64x32xf32> -> vector<64x32xf32>
    %55 = arith.addf %48, %54 : vector<64x32xf32>
    %c0_64 = arith.constant 0 : index
    %c2_65 = arith.constant 2 : index
    %c0_66 = arith.constant 0 : index
    %c0_67 = arith.constant 0 : index
    %56 = vector.load %arg9[%c0_64, %c2_65, %c0_66, %c0_67] : memref<1x10x10x32xf32, #tpu.memory_space<vmem>>, vector<1x8x8x32xf32>
    %57 = vector.shape_cast %56 : vector<1x8x8x32xf32> to vector<64x32xf32>
    %58 = arith.truncf %57 : vector<64x32xf32> to vector<64x32xbf16>
    %c2_68 = arith.constant 2 : index
    %c0_69 = arith.constant 0 : index
    %c0_70 = arith.constant 0 : index
    %c0_71 = arith.constant 0 : index
    %59 = vector.load %arg5[%c2_68, %c0_69, %c0_70, %c0_71] : memref<3x3x32x32xbf16, #tpu.memory_space<vmem>>, vector<1x1x32x32xbf16>
    %60 = vector.shape_cast %59 : vector<1x1x32x32xbf16> to vector<32x32xbf16>
    %cst_72 = arith.constant dense<0.000000e+00> : vector<64x32xf32>
    %61 = tpu.matmul %58, %60, %cst_72 {dimension_numbers = #tpu.dot_dimension_numbers<[1], [0], [0], [1], [0, 0, 1, 1], [], []>} : vector<64x32xbf16>, vector<32x32xbf16>, vector<64x32xf32> -> vector<64x32xf32>
    %62 = arith.addf %55, %61 : vector<64x32xf32>
    %c0_73 = arith.constant 0 : index
    %c2_74 = arith.constant 2 : index
    %c1_75 = arith.constant 1 : index
    %c0_76 = arith.constant 0 : index
    %63 = vector.load %arg9[%c0_73, %c2_74, %c1_75, %c0_76] : memref<1x10x10x32xf32, #tpu.memory_space<vmem>>, vector<1x8x8x32xf32>
    %64 = vector.shape_cast %63 : vector<1x8x8x32xf32> to vector<64x32xf32>
    %65 = arith.truncf %64 : vector<64x32xf32> to vector<64x32xbf16>
    %c2_77 = arith.constant 2 : index
    %c1_78 = arith.constant 1 : index
    %c0_79 = arith.constant 0 : index
    %c0_80 = arith.constant 0 : index
    %66 = vector.load %arg5[%c2_77, %c1_78, %c0_79, %c0_80] : memref<3x3x32x32xbf16, #tpu.memory_space<vmem>>, vector<1x1x32x32xbf16>
    %67 = vector.shape_cast %66 : vector<1x1x32x32xbf16> to vector<32x32xbf16>
    %cst_81 = arith.constant dense<0.000000e+00> : vector<64x32xf32>
    %68 = tpu.matmul %65, %67, %cst_81 {dimension_numbers = #tpu.dot_dimension_numbers<[1], [0], [0], [1], [0, 0, 1, 1], [], []>} : vector<64x32xbf16>, vector<32x32xbf16>, vector<64x32xf32> -> vector<64x32xf32>
    %69 = arith.addf %62, %68 : vector<64x32xf32>
    %c0_82 = arith.constant 0 : index
    %c2_83 = arith.constant 2 : index
    %c2_84 = arith.constant 2 : index
    %c0_85 = arith.constant 0 : index
    %70 = vector.load %arg9[%c0_82, %c2_83, %c2_84, %c0_85] : memref<1x10x10x32xf32, #tpu.memory_space<vmem>>, vector<1x8x8x32xf32>
    %71 = vector.shape_cast %70 : vector<1x8x8x32xf32> to vector<64x32xf32>
    %72 = arith.truncf %71 : vector<64x32xf32> to vector<64x32xbf16>
    %c2_86 = arith.constant 2 : index
    %c2_87 = arith.constant 2 : index
    %c0_88 = arith.constant 0 : index
    %c0_89 = arith.constant 0 : index
    %73 = vector.load %arg5[%c2_86, %c2_87, %c0_88, %c0_89] : memref<3x3x32x32xbf16, #tpu.memory_space<vmem>>, vector<1x1x32x32xbf16>
    %74 = vector.shape_cast %73 : vector<1x1x32x32xbf16> to vector<32x32xbf16>
    %cst_90 = arith.constant dense<0.000000e+00> : vector<64x32xf32>
    %75 = tpu.matmul %72, %74, %cst_90 {dimension_numbers = #tpu.dot_dimension_numbers<[1], [0], [0], [1], [0, 0, 1, 1], [], []>} : vector<64x32xbf16>, vector<32x32xbf16>, vector<64x32xf32> -> vector<64x32xf32>
    %76 = arith.addf %69, %75 : vector<64x32xf32>
    %77 = vector.shape_cast %76 : vector<64x32xf32> to vector<1x8x8x32xf32>
    %c0_91 = arith.constant 0 : index
    %c0_92 = arith.constant 0 : index
    %c0_93 = arith.constant 0 : index
    %c0_94 = arith.constant 0 : index
    %78 = vector.load %arg6[%c0_91, %c0_92, %c0_93, %c0_94] : memref<1x8x8x32xf32, #tpu.memory_space<vmem>>, vector<1x8x8x32xf32>
    tpu.vector_store %arg6[%c0_91, %c0_92, %c0_93, %c0_94], %77 {strides = array<i32>} : memref<1x8x8x32xf32, #tpu.memory_space<vmem>>, vector<1x8x8x32xf32>,
    %c0_i32_95 = arith.constant 0 : i32
    %79 = arith.cmpi eq, %arg1, %c0_i32_95 : i32
    %80 = arith.extui %79 : i1 to i32
    %c0_i32_96 = arith.constant 0 : i32
    %81 = arith.cmpi ne, %80, %c0_i32_96 : i32
    scf.if %81 {
      %cst_111 = arith.constant 0.000000e+00 : f32
      %95 = vector.broadcast %cst_111 : f32 to vector<1x1x32xf32>
      %c0_112 = arith.constant 0 : index
      %c0_113 = arith.constant 0 : index
      %c0_114 = arith.constant 0 : index
      %96 = vector.load %arg7[%c0_112, %c0_113, %c0_114] : memref<1x1x32xf32, #tpu.memory_space<vmem>>, vector<1x1x32xf32>
      tpu.vector_store %arg7[%c0_112, %c0_113, %c0_114], %95 {strides = array<i32>} : memref<1x1x32xf32, #tpu.memory_space<vmem>>, vector<1x1x32xf32>,
      %cst_115 = arith.constant 0.000000e+00 : f32
      %97 = vector.broadcast %cst_115 : f32 to vector<1x1x32xf32>
      %c0_116 = arith.constant 0 : index
      %c0_117 = arith.constant 0 : index
      %c0_118 = arith.constant 0 : index
      %98 = vector.load %arg8[%c0_116, %c0_117, %c0_118] : memref<1x1x32xf32, #tpu.memory_space<vmem>>, vector<1x1x32xf32>
      tpu.vector_store %arg8[%c0_116, %c0_117, %c0_118], %97 {strides = array<i32>} : memref<1x1x32xf32, #tpu.memory_space<vmem>>, vector<1x1x32xf32>,
    } else {
    }
    %c0_97 = arith.constant 0 : index
    %c0_98 = arith.constant 0 : index
    %c0_99 = arith.constant 0 : index
    %82 = vector.load %arg7[%c0_97, %c0_98, %c0_99] : memref<1x1x32xf32, #tpu.memory_space<vmem>>, vector<1x1x32xf32>
    %cst_100 = arith.constant dense<0.000000e+00> : vector<32xf32>
    %83 = vector.multi_reduction <add>, %76, %cst_100 [0] : vector<64x32xf32> to vector<32xf32>
    %84 = vector.shape_cast %83 : vector<32xf32> to vector<1x32xf32>
    %85 = vector.shape_cast %84 : vector<1x32xf32> to vector<1x1x32xf32>
    %86 = arith.addf %82, %85 : vector<1x1x32xf32>
    %c0_101 = arith.constant 0 : index
    %c0_102 = arith.constant 0 : index
    %c0_103 = arith.constant 0 : index
    %87 = vector.load %arg7[%c0_101, %c0_102, %c0_103] : memref<1x1x32xf32, #tpu.memory_space<vmem>>, vector<1x1x32xf32>
    tpu.vector_store %arg7[%c0_101, %c0_102, %c0_103], %86 {strides = array<i32>} : memref<1x1x32xf32, #tpu.memory_space<vmem>>, vector<1x1x32xf32>,
    %c0_104 = arith.constant 0 : index
    %c0_105 = arith.constant 0 : index
    %c0_106 = arith.constant 0 : index
    %88 = vector.load %arg8[%c0_104, %c0_105, %c0_106] : memref<1x1x32xf32, #tpu.memory_space<vmem>>, vector<1x1x32xf32>
    %89 = arith.mulf %76, %76 : vector<64x32xf32>
    %cst_107 = arith.constant dense<0.000000e+00> : vector<32xf32>
    %90 = vector.multi_reduction <add>, %89, %cst_107 [0] : vector<64x32xf32> to vector<32xf32>
    %91 = vector.shape_cast %90 : vector<32xf32> to vector<1x32xf32>
    %92 = vector.shape_cast %91 : vector<1x32xf32> to vector<1x1x32xf32>
    %93 = arith.addf %88, %92 : vector<1x1x32xf32>
    %c0_108 = arith.constant 0 : index
    %c0_109 = arith.constant 0 : index
    %c0_110 = arith.constant 0 : index
    %94 = vector.load %arg8[%c0_108, %c0_109, %c0_110] : memref<1x1x32xf32, #tpu.memory_space<vmem>>, vector<1x1x32xf32>
    tpu.vector_store %arg8[%c0_108, %c0_109, %c0_110], %93 {strides = array<i32>} : memref<1x1x32xf32, #tpu.memory_space<vmem>>, vector<1x1x32xf32>,
    return
  }
  func.func @transform_0(%arg0: i32, %arg1: i32) -> (i32, i32, i32, i32) {
    %c1_i32 = arith.constant 1 : i32
    %0 = arith.muli %arg0, %c1_i32 : i32
    %1 = arith.addi %0, %arg1 : i32
    %c0_i32 = arith.constant 0 : i32
    %c0_i32_0 = arith.constant 0 : i32
    %c0_i32_1 = arith.constant 0 : i32
    %c0_i32_2 = arith.constant 0 : i32
    return %1, %c0_i32, %c0_i32_0, %c0_i32_1 : i32, i32, i32, i32
  }
  func.func @transform_1(%arg0: i32, %arg1: i32) -> (i32, i32) {
    %c0_i32 = arith.constant 0 : i32
    %c0_i32_0 = arith.constant 0 : i32
    %c0_i32_1 = arith.constant 0 : i32
    return %c0_i32, %c0_i32_0 : i32, i32
  }
  func.func @transform_2(%arg0: i32, %arg1: i32) -> (i32, i32) {
    %c0_i32 = arith.constant 0 : i32
    %c0_i32_0 = arith.constant 0 : i32
    %c0_i32_1 = arith.constant 0 : i32
    return %c0_i32, %c0_i32_0 : i32, i32
  }
  func.func @transform_3(%arg0: i32, %arg1: i32) -> (i32, i32, i32, i32) {
    %c0_i32 = arith.constant 0 : i32
    %c0_i32_0 = arith.constant 0 : i32
    %c0_i32_1 = arith.constant 0 : i32
    %c0_i32_2 = arith.constant 0 : i32
    %c0_i32_3 = arith.constant 0 : i32
    return %c0_i32, %c0_i32_0, %c0_i32_1, %c0_i32_2 : i32, i32, i32, i32
  }
  func.func @transform_4(%arg0: i32, %arg1: i32) -> (i32, i32, i32, i32) {
    %c1_i32 = arith.constant 1 : i32
    %0 = arith.muli %arg0, %c1_i32 : i32
    %1 = arith.addi %0, %arg1 : i32
    %c0_i32 = arith.constant 0 : i32
    %c0_i32_0 = arith.constant 0 : i32
    %c0_i32_1 = arith.constant 0 : i32
    %c0_i32_2 = arith.constant 0 : i32
    return %1, %c0_i32, %c0_i32_0, %c0_i32_1 : i32, i32, i32, i32
  }
  func.func @transform_5(%arg0: i32, %arg1: i32) -> (i32, i32, i32) {
    %c0_i32 = arith.constant 0 : i32
    %c0_i32_0 = arith.constant 0 : i32
    %c0_i32_1 = arith.constant 0 : i32
    return %arg0, %c0_i32, %c0_i32_0 : i32, i32, i32
  }
  func.func @transform_6(%arg0: i32, %arg1: i32) -> (i32, i32, i32) {
    %c0_i32 = arith.constant 0 : i32
    %c0_i32_0 = arith.constant 0 : i32
    %c0_i32_1 = arith.constant 0 : i32
    return %arg0, %c0_i32, %c0_i32_0 : i32, i32, i32
  }
}

module attributes {stable_mosaic.version = 11 : i64} {
  func.func @kernel(%arg0: i32, %arg1: i32, %arg2: memref<64x32xf32, #tpu.memory_space<vmem>>, %arg3: memref<1x32xf32, #tpu.memory_space<vmem>>, %arg4: memref<1x32xf32, #tpu.memory_space<vmem>>, %arg5: memref<32x128xbf16, #tpu.memory_space<vmem>>, %arg6: memref<64x128xf32, #tpu.memory_space<vmem>>, %arg7: memref<1x1x128xf32, #tpu.memory_space<vmem>>, %arg8: memref<1x1x128xf32, #tpu.memory_space<vmem>>) attributes {dimension_semantics = [#tpu.dimension_semantics<parallel>, #tpu.dimension_semantics<arbitrary>], iteration_bounds = array<i64: 2, 1>, scalar_prefetch = 0 : i64, scratch_operands = 0 : i64, tpu.core_type = #tpu.core_type<tc>, window_params = [{transform_indices = @transform_0, window_bounds = array<i64: 64, 32>}, {pipeline_mode = #tpu.pipeline_mode<synchronous>, transform_indices = @transform_1, window_bounds = array<i64: 1, 32>}, {pipeline_mode = #tpu.pipeline_mode<synchronous>, transform_indices = @transform_2, window_bounds = array<i64: 1, 32>}, {pipeline_mode = #tpu.pipeline_mode<synchronous>, transform_indices = @transform_3, window_bounds = array<i64: 32, 128>}, {transform_indices = @transform_4, window_bounds = array<i64: 64, 128>}, {transform_indices = @transform_5, window_bounds = array<i64: 1, 1, 128>}, {transform_indices = @transform_6, window_bounds = array<i64: 1, 1, 128>}]} {
    %c0 = arith.constant 0 : index
    %c0_0 = arith.constant 0 : index
    %0 = vector.load %arg2[%c0, %c0_0] : memref<64x32xf32, #tpu.memory_space<vmem>>, vector<64x32xf32>
    %c0_1 = arith.constant 0 : index
    %c0_2 = arith.constant 0 : index
    %1 = vector.load %arg3[%c0_1, %c0_2] : memref<1x32xf32, #tpu.memory_space<vmem>>, vector<1x32xf32>
    %2 = vector.broadcast %1 : vector<1x32xf32> to vector<64x32xf32>
    %3 = arith.mulf %0, %2 : vector<64x32xf32>
    %c0_3 = arith.constant 0 : index
    %c0_4 = arith.constant 0 : index
    %4 = vector.load %arg4[%c0_3, %c0_4] : memref<1x32xf32, #tpu.memory_space<vmem>>, vector<1x32xf32>
    %5 = vector.broadcast %4 : vector<1x32xf32> to vector<64x32xf32>
    %6 = arith.addf %3, %5 : vector<64x32xf32>
    %cst = arith.constant 0.000000e+00 : f32
    %7 = vector.broadcast %cst : f32 to vector<64x32xf32>
    %8 = arith.maximumf %6, %7 : vector<64x32xf32>
    %9 = arith.truncf %8 : vector<64x32xf32> to vector<64x32xbf16>
    %c0_5 = arith.constant 0 : index
    %c0_6 = arith.constant 0 : index
    %10 = vector.load %arg5[%c0_5, %c0_6] : memref<32x128xbf16, #tpu.memory_space<vmem>>, vector<32x128xbf16>
    %cst_7 = arith.constant dense<0.000000e+00> : vector<64x128xf32>
    %11 = tpu.matmul %9, %10, %cst_7 {dimension_numbers = #tpu.dot_dimension_numbers<[1], [0], [0], [1], [0, 0, 1, 1], [], []>} : vector<64x32xbf16>, vector<32x128xbf16>, vector<64x128xf32> -> vector<64x128xf32>
    %c0_8 = arith.constant 0 : index
    %c0_9 = arith.constant 0 : index
    %12 = vector.load %arg6[%c0_8, %c0_9] : memref<64x128xf32, #tpu.memory_space<vmem>>, vector<64x128xf32>
    tpu.vector_store %arg6[%c0_8, %c0_9], %11 {strides = array<i32>} : memref<64x128xf32, #tpu.memory_space<vmem>>, vector<64x128xf32>,
    %c0_i32 = arith.constant 0 : i32
    %13 = arith.cmpi eq, %arg1, %c0_i32 : i32
    %14 = arith.extui %13 : i1 to i32
    %c0_i32_10 = arith.constant 0 : i32
    %15 = arith.cmpi ne, %14, %c0_i32_10 : i32
    scf.if %15 {
      %cst_25 = arith.constant 0.000000e+00 : f32
      %29 = vector.broadcast %cst_25 : f32 to vector<1x1x128xf32>
      %c0_26 = arith.constant 0 : index
      %c0_27 = arith.constant 0 : index
      %c0_28 = arith.constant 0 : index
      %30 = vector.load %arg7[%c0_26, %c0_27, %c0_28] : memref<1x1x128xf32, #tpu.memory_space<vmem>>, vector<1x1x128xf32>
      tpu.vector_store %arg7[%c0_26, %c0_27, %c0_28], %29 {strides = array<i32>} : memref<1x1x128xf32, #tpu.memory_space<vmem>>, vector<1x1x128xf32>,
      %cst_29 = arith.constant 0.000000e+00 : f32
      %31 = vector.broadcast %cst_29 : f32 to vector<1x1x128xf32>
      %c0_30 = arith.constant 0 : index
      %c0_31 = arith.constant 0 : index
      %c0_32 = arith.constant 0 : index
      %32 = vector.load %arg8[%c0_30, %c0_31, %c0_32] : memref<1x1x128xf32, #tpu.memory_space<vmem>>, vector<1x1x128xf32>
      tpu.vector_store %arg8[%c0_30, %c0_31, %c0_32], %31 {strides = array<i32>} : memref<1x1x128xf32, #tpu.memory_space<vmem>>, vector<1x1x128xf32>,
    } else {
    }
    %c0_11 = arith.constant 0 : index
    %c0_12 = arith.constant 0 : index
    %c0_13 = arith.constant 0 : index
    %16 = vector.load %arg7[%c0_11, %c0_12, %c0_13] : memref<1x1x128xf32, #tpu.memory_space<vmem>>, vector<1x1x128xf32>
    %cst_14 = arith.constant dense<0.000000e+00> : vector<128xf32>
    %17 = vector.multi_reduction <add>, %11, %cst_14 [0] : vector<64x128xf32> to vector<128xf32>
    %18 = vector.shape_cast %17 : vector<128xf32> to vector<1x128xf32>
    %19 = vector.shape_cast %18 : vector<1x128xf32> to vector<1x1x128xf32>
    %20 = arith.addf %16, %19 : vector<1x1x128xf32>
    %c0_15 = arith.constant 0 : index
    %c0_16 = arith.constant 0 : index
    %c0_17 = arith.constant 0 : index
    %21 = vector.load %arg7[%c0_15, %c0_16, %c0_17] : memref<1x1x128xf32, #tpu.memory_space<vmem>>, vector<1x1x128xf32>
    tpu.vector_store %arg7[%c0_15, %c0_16, %c0_17], %20 {strides = array<i32>} : memref<1x1x128xf32, #tpu.memory_space<vmem>>, vector<1x1x128xf32>,
    %c0_18 = arith.constant 0 : index
    %c0_19 = arith.constant 0 : index
    %c0_20 = arith.constant 0 : index
    %22 = vector.load %arg8[%c0_18, %c0_19, %c0_20] : memref<1x1x128xf32, #tpu.memory_space<vmem>>, vector<1x1x128xf32>
    %23 = arith.mulf %11, %11 : vector<64x128xf32>
    %cst_21 = arith.constant dense<0.000000e+00> : vector<128xf32>
    %24 = vector.multi_reduction <add>, %23, %cst_21 [0] : vector<64x128xf32> to vector<128xf32>
    %25 = vector.shape_cast %24 : vector<128xf32> to vector<1x128xf32>
    %26 = vector.shape_cast %25 : vector<1x128xf32> to vector<1x1x128xf32>
    %27 = arith.addf %22, %26 : vector<1x1x128xf32>
    %c0_22 = arith.constant 0 : index
    %c0_23 = arith.constant 0 : index
    %c0_24 = arith.constant 0 : index
    %28 = vector.load %arg8[%c0_22, %c0_23, %c0_24] : memref<1x1x128xf32, #tpu.memory_space<vmem>>, vector<1x1x128xf32>
    tpu.vector_store %arg8[%c0_22, %c0_23, %c0_24], %27 {strides = array<i32>} : memref<1x1x128xf32, #tpu.memory_space<vmem>>, vector<1x1x128xf32>,
    return
  }
  func.func @transform_0(%arg0: i32, %arg1: i32) -> (i32, i32) {
    %c1_i32 = arith.constant 1 : i32
    %0 = arith.muli %arg0, %c1_i32 : i32
    %1 = arith.addi %0, %arg1 : i32
    %c0_i32 = arith.constant 0 : i32
    %c0_i32_0 = arith.constant 0 : i32
    return %1, %c0_i32 : i32, i32
  }
  func.func @transform_1(%arg0: i32, %arg1: i32) -> (i32, i32) {
    %c0_i32 = arith.constant 0 : i32
    %c0_i32_0 = arith.constant 0 : i32
    %c0_i32_1 = arith.constant 0 : i32
    return %c0_i32, %c0_i32_0 : i32, i32
  }
  func.func @transform_2(%arg0: i32, %arg1: i32) -> (i32, i32) {
    %c0_i32 = arith.constant 0 : i32
    %c0_i32_0 = arith.constant 0 : i32
    %c0_i32_1 = arith.constant 0 : i32
    return %c0_i32, %c0_i32_0 : i32, i32
  }
  func.func @transform_3(%arg0: i32, %arg1: i32) -> (i32, i32) {
    %c0_i32 = arith.constant 0 : i32
    %c0_i32_0 = arith.constant 0 : i32
    %c0_i32_1 = arith.constant 0 : i32
    return %c0_i32, %c0_i32_0 : i32, i32
  }
  func.func @transform_4(%arg0: i32, %arg1: i32) -> (i32, i32) {
    %c1_i32 = arith.constant 1 : i32
    %0 = arith.muli %arg0, %c1_i32 : i32
    %1 = arith.addi %0, %arg1 : i32
    %c0_i32 = arith.constant 0 : i32
    %c0_i32_0 = arith.constant 0 : i32
    return %1, %c0_i32 : i32, i32
  }
  func.func @transform_5(%arg0: i32, %arg1: i32) -> (i32, i32, i32) {
    %c0_i32 = arith.constant 0 : i32
    %c0_i32_0 = arith.constant 0 : i32
    %c0_i32_1 = arith.constant 0 : i32
    return %arg0, %c0_i32, %c0_i32_0 : i32, i32, i32
  }
  func.func @transform_6(%arg0: i32, %arg1: i32) -> (i32, i32, i32) {
    %c0_i32 = arith.constant 0 : i32
    %c0_i32_0 = arith.constant 0 : i32
    %c0_i32_1 = arith.constant 0 : i32
    return %arg0, %c0_i32, %c0_i32_0 : i32, i32, i32
  }
}

module attributes {stable_mosaic.version = 11 : i64} {
  func.func @_bn_add_relu_kernel(%arg0: i32, %arg1: memref<64x128xf32, #tpu.memory_space<vmem>>, %arg2: memref<1x128xf32, #tpu.memory_space<vmem>>, %arg3: memref<1x128xf32, #tpu.memory_space<vmem>>, %arg4: memref<64x128xf32, #tpu.memory_space<vmem>>, %arg5: memref<64x128xf32, #tpu.memory_space<vmem>>) attributes {dimension_semantics = [#tpu.dimension_semantics<parallel>], iteration_bounds = array<i64: 2>, scalar_prefetch = 0 : i64, scratch_operands = 0 : i64, tpu.core_type = #tpu.core_type<tc>, window_params = [{transform_indices = @transform_0, window_bounds = array<i64: 64, 128>}, {pipeline_mode = #tpu.pipeline_mode<synchronous>, transform_indices = @transform_1, window_bounds = array<i64: 1, 128>}, {pipeline_mode = #tpu.pipeline_mode<synchronous>, transform_indices = @transform_2, window_bounds = array<i64: 1, 128>}, {transform_indices = @transform_3, window_bounds = array<i64: 64, 128>}, {transform_indices = @transform_4, window_bounds = array<i64: 64, 128>}]} {
    %c0 = arith.constant 0 : index
    %c0_0 = arith.constant 0 : index
    %0 = vector.load %arg1[%c0, %c0_0] : memref<64x128xf32, #tpu.memory_space<vmem>>, vector<64x128xf32>
    %c0_1 = arith.constant 0 : index
    %c0_2 = arith.constant 0 : index
    %1 = vector.load %arg2[%c0_1, %c0_2] : memref<1x128xf32, #tpu.memory_space<vmem>>, vector<1x128xf32>
    %2 = vector.broadcast %1 : vector<1x128xf32> to vector<64x128xf32>
    %3 = arith.mulf %0, %2 : vector<64x128xf32>
    %c0_3 = arith.constant 0 : index
    %c0_4 = arith.constant 0 : index
    %4 = vector.load %arg3[%c0_3, %c0_4] : memref<1x128xf32, #tpu.memory_space<vmem>>, vector<1x128xf32>
    %5 = vector.broadcast %4 : vector<1x128xf32> to vector<64x128xf32>
    %6 = arith.addf %3, %5 : vector<64x128xf32>
    %c0_5 = arith.constant 0 : index
    %c0_6 = arith.constant 0 : index
    %7 = vector.load %arg4[%c0_5, %c0_6] : memref<64x128xf32, #tpu.memory_space<vmem>>, vector<64x128xf32>
    %8 = arith.addf %6, %7 : vector<64x128xf32>
    %cst = arith.constant 0.000000e+00 : f32
    %9 = vector.broadcast %cst : f32 to vector<64x128xf32>
    %10 = arith.maximumf %8, %9 : vector<64x128xf32>
    %c0_7 = arith.constant 0 : index
    %c0_8 = arith.constant 0 : index
    %11 = vector.load %arg5[%c0_7, %c0_8] : memref<64x128xf32, #tpu.memory_space<vmem>>, vector<64x128xf32>
    tpu.vector_store %arg5[%c0_7, %c0_8], %10 {strides = array<i32>} : memref<64x128xf32, #tpu.memory_space<vmem>>, vector<64x128xf32>,
    return
  }
  func.func @transform_0(%arg0: i32) -> (i32, i32) {
    %c0_i32 = arith.constant 0 : i32
    %c0_i32_0 = arith.constant 0 : i32
    return %arg0, %c0_i32 : i32, i32
  }
  func.func @transform_1(%arg0: i32) -> (i32, i32) {
    %c0_i32 = arith.constant 0 : i32
    %c0_i32_0 = arith.constant 0 : i32
    %c0_i32_1 = arith.constant 0 : i32
    return %c0_i32, %c0_i32_0 : i32, i32
  }
  func.func @transform_2(%arg0: i32) -> (i32, i32) {
    %c0_i32 = arith.constant 0 : i32
    %c0_i32_0 = arith.constant 0 : i32
    %c0_i32_1 = arith.constant 0 : i32
    return %c0_i32, %c0_i32_0 : i32, i32
  }
  func.func @transform_3(%arg0: i32) -> (i32, i32) {
    %c0_i32 = arith.constant 0 : i32
    %c0_i32_0 = arith.constant 0 : i32
    return %arg0, %c0_i32 : i32, i32
  }
  func.func @transform_4(%arg0: i32) -> (i32, i32) {
    %c0_i32 = arith.constant 0 : i32
    %c0_i32_0 = arith.constant 0 : i32
    return %arg0, %c0_i32 : i32, i32
  }
}

</mosaic_0001>

<bundles_post_ra>
// kernel: bottleneck_forward.4
= control target key start
LH: loop header
LB: loop body
LE: loop exit
PB: predicated region body
PF: predicated region fallthrough
CT: control target
= control target key end

     0   :  { %s729_s15 = smov 0   ;;  %s731_s16 = smov 0   ;;  %s852_s0 = inlined_call_operand.vmem [shape: f32[128,128], index: 0, kind: input, shape index: {}]   ;;  %s853_s1 = inlined_call_operand.vmem [shape: bf16[128,32], index: 1, kind: input, shape index: {}]   ;;  %s854_s2 = inlined_call_operand.vmem [shape: f32[128,32], index: 2, kind: output, shape index: {0}]   ;;  %s855_s3 = inlined_call_operand.vmem [shape: f32[2,1,32], index: 3, kind: output, shape index: {1}]   ;;  %s856_s4 = inlined_call_operand.vmem [shape: f32[2,1,32], index: 4, kind: output, shape index: {2}]  }
   0x1   :  { %s733_s17 = smov 0  }
   0x2 LB: > { %s27_s18 = sadd.s32 1, %s697_s16  ;;  %p579_p0 = scmp.ge.s32.totalorder %s701_s17, 1  ;;  %s701_s17 = sphi %s733_s17, %s15_s17   ;;  %s697_s16 = sphi %s731_s16, %s858_s16   ;;  %s693_s15 = sphi %s729_s15, %s857_s15  }
   0x3   : > { %p29_p1 = scmp.ge.s32.totalorder %s27_s18, 2  ;;  %p186_p2 = scmp.lt.s32.totalorder %s701_s17, 3 }
   0x5   : > { %s860_s18 = smov (%p29_p1, %s27_s18), 0  ;;  %p187_p3 = pnand %p579_p0, %p186_p2 }
   0x6   : > { %s580_s21 = sshll.u32 (!%p187_p3), %s693_s15, 3  ;;  %p236_p5 = scmp.lt.s32.totalorder (!%p187_p3), %s693_s15, 1 }
   0x7   : > { %190 = sbr.rel (%p187_p3) target bundleno = 276 (0x114), region = 28  ;;  %p222_p4 = scmp.lt.s32.totalorder (!%p187_p3), %s580_s21, 15 }
   0xc   : > { %v671_v0 = vld [vmem:[%s853_s1 + $0x38] sm:$0xff]   ;;  %v672_v1 = vld [vmem:[%s853_s1 + $0x30] sm:$0xff]   ;;  %s862_s21 = smov (!%p222_p4, %s580_s21), 15  ;;  %v673_v2 = vld [vmem:[%s853_s1 + $0x28] sm:$0xff]   ;;  %s864_s15 = smov (!%p236_p5, %s693_s15), 1  ;;  %vm397_vm0 = vcmask 253952  }
   0xd   : > { %606 = vmatprep.subr.bf16.mxu0 %v671_v0  ;;  %630 = vmatprep.subr.bf16.mxu1 %v671_v0  ;;  %s581_s26 = sshll.u32 %s862_s21, 3  ;;  %v674_v3 = vld [vmem:[%s853_s1 + $0x20] sm:$0xff]   ;;  %v675_v10 = vld [vmem:[%s853_s1 + $0x18] sm:$0xff]   ;;  %v676_v11 = vld [vmem:[%s853_s1 + $0x10] sm:$0xff]   ;;  %s797_s20 = scalar_lea.vmem %s855_s3, %s864_s15  ;;  %v703_v20 = vmov 0.0   ;;  %vm384_vm1 = vcmask 261120  }
   0xe   : > { %607 = vmatpush3.bf16.msra.mxu0 %v671_v0  ;;  %638 = vmatpush3.bf16.msra.mxu1 %v671_v0  ;;  %s767_s29 = scalar_lea.vmem %s852_s0, %s581_s26  ;;  %v677_v12 = vld [vmem:[%s853_s1 + $0x8] sm:$0xff]   ;;  %v678_v13 = vld [vmem:[%s853_s1] sm:$0xff]   ;;  %s802_s24 = scalar_lea.vmem %s856_s4, %s864_s15  ;;  %398 = vst.msk [vmem:[%s797_s20] sm:$0x1] %vm397_vm0, %v703_v20 }
   0xf   : > { %608 = vmatprep.subr.bf16.mxu0 %v672_v1  ;;  %631 = vmatprep.subr.bf16.mxu1 %v672_v1  ;;  %v243_v4 = vld [vmem:[%s767_s29] sm:$0xff]  ;;  %v244_v5 = vld [vmem:[%s767_s29 + $0x8] sm:$0xff]  ;;  %v245_v14 = vld [vmem:[%s767_s29 + $0x10] sm:$0xff]  ;;  %399 = vst.msk [vmem:[%s802_s24] sm:$0x1] %vm397_vm0, %v703_v20  ;;  %s233_s28 = scalar_lea.vmem %s854_s2, %s581_s26 }
  0x10   : > { %v251_v6 = vpack.c.bf16 %v244_v5, %v243_v4  ;;  %v247_v7 = vld [vmem:[%s767_s29 + $0x20] sm:$0xff]  ;;  %v248_v8 = vld [vmem:[%s767_s29 + $0x28] sm:$0xff]  ;;  %v246_v15 = vld [vmem:[%s767_s29 + $0x18] sm:$0xff] }
  0x11   : > { %v253_v9 = vpack.c.bf16 %v248_v8, %v247_v7  ;;  %v249_v16 = vld [vmem:[%s767_s29 + $0x30] sm:$0xff]  ;;  %v250_v17 = vld [vmem:[%s767_s29 + $0x38] sm:$0xff]  ;;  %v252_v18 = vpack.c.bf16 %v246_v15, %v245_v14 }
  0x12   : > { %609 = vmatpush3.bf16.msra.mxu0 %v672_v1  ;;  %639 = vmatpush3.bf16.msra.mxu1 %v672_v1  ;;  %v254_v19 = vpack.c.bf16 %v250_v17, %v249_v16 }
  0x13   : > { %610 = vmatprep.subr.bf16.mxu0 %v673_v2  ;;  %632 = vmatprep.subr.bf16.mxu1 %v673_v2 }
  0x14   : > { %622 = vmatprep.mubr.bf16.mxu0 %v251_v6  ;;  %626 = vmatprep.mubr.bf16.mxu1 %v253_v9 }
  0x16   : > { %611 = vmatpush3.bf16.msra.mxu0 %v673_v2  ;;  %640 = vmatpush3.bf16.msra.mxu1 %v673_v2  ;;  %v425_v15 = vld [vmem:[%s802_s24] sm:$0x1] }
  0x17   : > { %612 = vmatprep.subr.bf16.mxu0 %v674_v3  ;;  %633 = vmatprep.subr.bf16.mxu1 %v674_v3 }
  0x1a   : > { %613 = vmatpush3.bf16.msra.mxu0 %v674_v3  ;;  %641 = vmatpush3.bf16.msra.mxu1 %v674_v3 }
  0x1b   : > { %614 = vmatprep.subr.bf16.mxu0 %v675_v10  ;;  %634 = vmatprep.subr.bf16.mxu1 %v675_v10 }
  0x1e   : > { %615 = vmatpush3.bf16.msra.mxu0 %v675_v10  ;;  %642 = vmatpush3.bf16.msra.mxu1 %v675_v10 }
  0x1f   : > { %616 = vmatprep.subr.bf16.mxu0 %v676_v11  ;;  %635 = vmatprep.subr.bf16.mxu1 %v676_v11 }
  0x22   : > { %617 = vmatpush3.bf16.msra.mxu0 %v676_v11  ;;  %643 = vmatpush3.bf16.msra.mxu1 %v676_v11 }
  0x23   : > { %618 = vmatprep.subr.bf16.mxu0 %v677_v12  ;;  %636 = vmatprep.subr.bf16.mxu1 %v677_v12 }
  0x26   : > { %619 = vmatpush3.bf16.msra.mxu0 %v677_v12  ;;  %644 = vmatpush3.bf16.msra.mxu1 %v677_v12  ;;  %v400_v12 = vld [vmem:[%s797_s20] sm:$0x1] }
  0x27   : > { %620 = vmatprep.subr.bf16.mxu0 %v678_v13  ;;  %637 = vmatprep.subr.bf16.mxu1 %v678_v13 }
  0x2a   : > { %621 = vmatpush3.bf16.msra.mxu0 %v678_v13  ;;  %645 = vmatpush3.bf16.msra.mxu1 %v678_v13 }
  0x2d   : > { %623 = vmatmul.mubr.bf16.vlgmr.msra.gmra.mxu0 %v252_v18  ;;  %627 = vmatmul.mubr.bf16.vlgmr.msra.gmra.mxu1 %v254_v19 }
  0xed   : > { %v624_v21 = vpop.f32.mrf.mxu0  ;;  %v628_v22 = vpop.f32.mrf.mxu1 }
  0xee   : > { %387 = vst.msk [vmem:[%s233_s28 + $0x10] sm:$0xff] %vm384_vm1, %v624_v21  ;;  %391 = vst.msk [vmem:[%s233_s28 + $0x30] sm:$0xff] %vm384_vm1, %v628_v22  ;;  %v428_v30 = vmul.f32 %v624_v21, %v624_v21  ;;  %v404_v35 = vsel %vm384_vm1, %v624_v21, 0.0  ;;  %v432_v51 = vmul.f32 %v628_v22, %v628_v22  ;;  %v412_v56 = vsel %vm384_vm1, %v628_v22, 0.0 }
  0xef   : > { %v353_v23 = vpop.f32.mrf.mxu0  ;;  %v369_v24 = vpop.f32.mrf.mxu1 }
  0xf0   : > { %385 = vst.msk [vmem:[%s233_s28] sm:$0xff] %vm384_vm1, %v353_v23  ;;  %389 = vst.msk [vmem:[%s233_s28 + $0x20] sm:$0xff] %vm384_vm1, %v369_v24  ;;  %v426_v27 = vmul.f32 %v353_v23, %v353_v23  ;;  %v401_v31 = vsel %vm384_vm1, %v353_v23, 0.0  ;;  %v437_v41 = vsel %vm384_vm1, %v428_v30, 0.0  ;;  %v430_v43 = vmul.f32 %v369_v24, %v369_v24 }
  0xf1   : > { %v625_v25 = vpop.f32.mrf.mxu0  ;;  %v629_v26 = vpop.f32.mrf.mxu1  ;;  %v408_v47 = vsel %vm384_vm1, %v369_v24, 0.0  ;;  %v445_v61 = vsel %vm384_vm1, %v432_v51, 0.0 }
  0xf2   : > { %388 = vst.msk [vmem:[%s233_s28 + $0x18] sm:$0xff] %vm384_vm1, %v625_v25  ;;  %392 = vst.msk [vmem:[%s233_s28 + $0x38] sm:$0xff] %vm384_vm1, %v629_v26  ;;  %v434_v36 = vsel %vm384_vm1, %v426_v27, 0.0  ;;  %v429_v37 = vmul.f32 %v625_v25, %v625_v25  ;;  %v406_v42 = vsel %vm384_vm1, %v625_v25, 0.0  ;;  %v441_v52 = vsel %vm384_vm1, %v430_v43, 0.0 }
  0xf3   : > { %v356_v28 = vpop.f32.mrf.mxu0  ;;  %v372_v29 = vpop.f32.mrf.mxu1  ;;  %v433_v57 = vmul.f32 %v629_v26, %v629_v26  ;;  %v414_v62 = vsel %vm384_vm1, %v629_v26, 0.0 }
  0xf4   : > { %386 = vst.msk [vmem:[%s233_s28 + $0x8] sm:$0xff] %vm384_vm1, %v356_v28  ;;  %v402_v32 = vsel %vm384_vm1, %v356_v28, 0.0  ;;  %v427_v33 = vmul.f32 %v356_v28, %v356_v28  ;;  %390 = vst.msk [vmem:[%s233_s28 + $0x28] sm:$0xff] %vm384_vm1, %v372_v29  ;;  %v439_v46 = vsel %vm384_vm1, %v429_v37, 0.0  ;;  %v431_v48 = vmul.f32 %v372_v29, %v372_v29 }
  0xf5   : > { %v403_v34 = vadd.f32 %v402_v32, %v401_v31  ;;  %v410_v53 = vsel %vm384_vm1, %v372_v29, 0.0  ;;  %v447_v1 = vsel %vm384_vm1, %v433_v57, 0.0 }
  0xf6   : > { %v435_v38 = vsel %vm384_vm1, %v427_v33, 0.0  ;;  %v443_v58 = vsel %vm384_vm1, %v431_v48, 0.0 }
  0xf7   : > { %v405_v39 = vadd.f32 %v404_v35, %v403_v34  ;;  %v436_v40 = vadd.f32 %v435_v38, %v434_v36 }
  0xf9   : > { %v438_v44 = vadd.f32 %v437_v41, %v436_v40  ;;  %v407_v45 = vadd.f32 %v406_v42, %v405_v39 }
  0xfb   : > { %v409_v49 = vadd.f32 %v408_v47, %v407_v45  ;;  %v440_v50 = vadd.f32 %v439_v46, %v438_v44 }
  0xfd   : > { %v411_v54 = vadd.f32 %v410_v53, %v409_v49  ;;  %v442_v55 = vadd.f32 %v441_v52, %v440_v50 }
  0xff   : > { %v413_v59 = vadd.f32 %v412_v56, %v411_v54  ;;  %v444_v60 = vadd.f32 %v443_v58, %v442_v55 }
 0x101   : > { %v415_v63 = vadd.f32 %v414_v62, %v413_v59  ;;  %v446_v0 = vadd.f32 %v445_v61, %v444_v60 }
 0x103   : > { %v416_v2 = vrot.slane %v415_v63, 4  ;;  %v448_v3 = vadd.f32 %v447_v1, %v446_v0 }
 0x105   : > { %v417_v4 = vadd.f32 %v416_v2, %v415_v63  ;;  %v449_v5 = vrot.slane %v448_v3, 4 }
 0x107   : > { %v418_v6 = vrot.slane %v417_v4, 2  ;;  %v450_v7 = vadd.f32 %v449_v5, %v448_v3 }
 0x109   : > { %v419_v8 = vadd.f32 %v418_v6, %v417_v4  ;;  %v451_v9 = vrot.slane %v450_v7, 2 }
 0x10b   : > { %v420_v10 = vrot.slane %v419_v8, 1  ;;  %v452_v11 = vadd.f32 %v451_v9, %v450_v7 }
 0x10d   : > { %v421_v13 = vadd.f32 %v420_v10, %v419_v8  ;;  %v453_v14 = vrot.slane %v452_v11, 1 }
 0x10f   : > { %v422_v16 = vadd.f32 %v421_v13, %v400_v12  ;;  %v454_v17 = vadd.f32 %v453_v14, %v452_v11 }
 0x111   : > { %424 = vst.msk [vmem:[%s797_s20] sm:$0x1] %vm397_vm0, %v422_v16  ;;  %v455_v18 = vadd.f32 %v454_v17, %v425_v15 }
 0x113   : > { %456 = vst.msk [vmem:[%s802_s24] sm:$0x1] %vm397_vm0, %v455_v18 }
 0x114 PF: > { %s15_s17 = sadd.s32 1, %s701_s17   ;;  %s857_s15 = smov %s697_s16 }
 0x115   : > { %p12_p6 = scmp.ge.s32.totalorder %s15_s17, 4   ;;  %s858_s16 = smov %s860_s18 }
 0x117   :  { %14 = sbr.rel (!%p12_p6) target bundleno = 2 (0x2), region = 86 }

// kernel: bottleneck_forward.6
= control target key start
LH: loop header
LB: loop body
LE: loop exit
PB: predicated region body
PF: predicated region fallthrough
CT: control target
= control target key end

     0   :  { %s741_s21 = smov 0   ;;  %s743_s22 = smov 0   ;;  %s818_s0 = inlined_call_operand.vmem [shape: f32[128,32], index: 0, kind: input, shape index: {}]   ;;  %s819_s1 = inlined_call_operand.vmem [shape: f32[1,32], index: 1, kind: input, shape index: {}]   ;;  %s820_s2 = inlined_call_operand.vmem [shape: f32[1,32], index: 2, kind: input, shape index: {}]   ;;  %s821_s3 = inlined_call_operand.vmem [shape: bf16[32,128], index: 3, kind: input, shape index: {}]   ;;  %s822_s4 = inlined_call_operand.vmem [shape: f32[128,128], index: 4, kind: output, shape index: {0}]   ;;  %s823_s5 = inlined_call_operand.vmem [shape: f32[2,1,128], index: 5, kind: output, shape index: {1}]   ;;  %s824_s6 = inlined_call_operand.vmem [shape: f32[2,1,128], index: 6, kind: output, shape index: {2}]  }
   0x1   :  { %s745_s23 = smov 0  }
   0x2 LB: > { %s29_s24 = sadd.s32 1, %s699_s22  ;;  %p617_p0 = scmp.ge.s32.totalorder %s703_s23, 1  ;;  %s703_s23 = sphi %s745_s23, %s17_s23   ;;  %s699_s22 = sphi %s743_s22, %s826_s22   ;;  %s695_s21 = sphi %s741_s21, %s825_s21  }
   0x3   : > { %p31_p1 = scmp.ge.s32.totalorder %s29_s24, 2  ;;  %p236_p2 = scmp.lt.s32.totalorder %s703_s23, 3 }
   0x5   : > { %s828_s24 = smov (%p31_p1, %s29_s24), 0  ;;  %p237_p3 = pnand %p617_p0, %p236_p2 }
   0x6   : > { %s618_s27 = sshll.u32 (!%p237_p3), %s695_s21, 3  ;;  %p290_p5 = scmp.lt.s32.totalorder (!%p237_p3), %s695_s21, 1 }
   0x7   : > { %240 = sbr.rel (%p237_p3) target bundleno = 255 (0xff), region = 36  ;;  %p276_p4 = scmp.lt.s32.totalorder (!%p237_p3), %s618_s27, 15 }
   0xc   : > { %v679_v0 = vld [vmem:[%s821_s3 + $0x8] sm:$0xff]   ;;  %v680_v1 = vld [vmem:[%s821_s3] sm:$0xff]   ;;  %s830_s27 = smov (!%p276_p4, %s618_s27), 15  ;;  %vm363_vm0 = vcmask 261120   ;;  %s832_s21 = smov (!%p290_p5, %s695_s21), 1  ;;  %v705_v40 = vmov 0.0  }
   0xd   : > { %638 = vmatprep.subr.bf16.mxu0 %v679_v0  ;;  %650 = vmatprep.subr.bf16.mxu1 %v679_v0  ;;  %s619_s30 = sshll.u32 %s830_s27, 3  ;;  %v622_v2 = vld [vmem:[%s819_s1] ss:$0 sm:$0xff]  ;;  %s791_s16 = scalar_lea.vmem %s823_s5, %s832_s21 }
   0xe   : > { %639 = vmatpush3.bf16.msra.mxu0 %v679_v0  ;;  %652 = vmatpush3.bf16.msra.mxu1 %v679_v0  ;;  %s279_s11 = scalar_lea.vmem %s818_s0, %s619_s30  ;;  %v623_v3 = vld [vmem:[%s820_s2] ss:$0 sm:$0xff]  ;;  %s796_s19 = scalar_lea.vmem %s824_s6, %s832_s21  ;;  %453 = vst [vmem:[%s791_s16] sm:$0x1] %v705_v40 }
   0xf   : > { %640 = vmatprep.subr.bf16.mxu0 %v680_v1  ;;  %651 = vmatprep.subr.bf16.mxu1 %v680_v1  ;;  %v297_v4 = vld [vmem:[%s279_s11] sm:$0xff]  ;;  %v298_v5 = vld [vmem:[%s279_s11 + $0x8] sm:$0xff]  ;;  %v299_v6 = vld [vmem:[%s279_s11 + $0x10] sm:$0xff]  ;;  %454 = vst [vmem:[%s796_s19] sm:$0x1] %v705_v40  ;;  %s287_s26 = scalar_lea.vmem %s822_s4, %s619_s30 }
  0x10   : > { %v312_v7 = vmul.f32 %v622_v2, %v297_v4  ;;  %v313_v8 = vmul.f32 %v622_v2, %v298_v5  ;;  %v300_v9 = vld [vmem:[%s279_s11 + $0x18] sm:$0xff]  ;;  %v314_v10 = vmul.f32 %v622_v2, %v299_v6  ;;  %v301_v11 = vld [vmem:[%s279_s11 + $0x20] sm:$0xff]  ;;  %v302_v12 = vld [vmem:[%s279_s11 + $0x28] sm:$0xff] }
  0x11   : > { %v315_v13 = vmul.f32 %v622_v2, %v300_v9  ;;  %v316_v14 = vmul.f32 %v622_v2, %v301_v11  ;;  %v317_v15 = vmul.f32 %v622_v2, %v302_v12  ;;  %v303_v16 = vld [vmem:[%s279_s11 + $0x30] sm:$0xff]  ;;  %v304_v17 = vld [vmem:[%s279_s11 + $0x38] sm:$0xff] }
  0x12   : > { %641 = vmatpush3.bf16.msra.mxu0 %v680_v1  ;;  %653 = vmatpush3.bf16.msra.mxu1 %v680_v1  ;;  %v327_v18 = vadd.f32 %v623_v3, %v312_v7  ;;  %v328_v19 = vadd.f32 %v623_v3, %v313_v8  ;;  %v329_v20 = vadd.f32 %v623_v3, %v314_v10 }
  0x13   : > { %v318_v21 = vmul.f32 %v622_v2, %v303_v16  ;;  %v330_v22 = vadd.f32 %v623_v3, %v315_v13  ;;  %v331_v23 = vadd.f32 %v623_v3, %v316_v14  ;;  %v332_v24 = vadd.f32 %v623_v3, %v317_v15 }
  0x14   : > { %v319_v25 = vmul.f32 %v622_v2, %v304_v17  ;;  %v335_v26 = vmax.f32 %v327_v18, 0.0  ;;  %v336_v27 = vmax.f32 %v328_v19, 0.0  ;;  %v337_v28 = vmax.f32 %v329_v20, 0.0 }
  0x15   : > { %v333_v29 = vadd.f32 %v623_v3, %v318_v21  ;;  %v338_v30 = vmax.f32 %v330_v22, 0.0  ;;  %v339_v31 = vmax.f32 %v331_v23, 0.0  ;;  %v340_v32 = vmax.f32 %v332_v24, 0.0  ;;  %v455_v16 = vld [vmem:[%s791_s16] sm:$0x1] }
  0x16   : > { %v334_v33 = vadd.f32 %v623_v3, %v319_v25  ;;  %v343_v34 = vpack.c.bf16 %v336_v27, %v335_v26  ;;  %v471_v19 = vld [vmem:[%s796_s19] sm:$0x1] }
  0x17   : > { %v341_v35 = vmax.f32 %v333_v29, 0.0  ;;  %v344_v36 = vpack.c.bf16 %v338_v30, %v337_v28  ;;  %v345_v37 = vpack.c.bf16 %v340_v32, %v339_v31 }
  0x18   : > { %v342_v38 = vmax.f32 %v334_v33, 0.0  ;;  %642 = vmatprep.mubr.msk.bf16.mxu0 %vm363_vm0, %v343_v34 }
  0x19   : > { %643 = vmatmul.mubr.msk.bf16.vlgmr.msra.gmra.mxu0 %vm363_vm0, %v344_v36  ;;  %646 = vmatprep.mubr.msk.bf16.mxu1 %vm363_vm0, %v345_v37 }
  0x1a   : > { %v346_v39 = vpack.c.bf16 %v342_v38, %v341_v35 }
  0x1c   : > { %647 = vmatmul.mubr.msk.bf16.vlgmr.msra.gmra.mxu1 %vm363_vm0, %v346_v39 }
  0xd9   : > { %v644_v41 = vpop.f32.mrf.mxu0 }
  0xda   : > { %443 = vst [vmem:[%s287_s26 + $0x10] sm:$0xff] %v644_v41  ;;  %v474_v52 = vmul.f32 %v644_v41, %v644_v41 }
  0xdb   : > { %v410_v42 = vpop.f32.mrf.mxu0 }
  0xdc   : > { %v648_v43 = vpop.f32.mrf.mxu1  ;;  %441 = vst [vmem:[%s287_s26] sm:$0xff] %v410_v42  ;;  %v472_v48 = vmul.f32 %v410_v42, %v410_v42 }
  0xdd   : > { %447 = vst [vmem:[%s287_s26 + $0x30] sm:$0xff] %v648_v43  ;;  %v645_v44 = vpop.f32.mrf.mxu0  ;;  %v478_v0 = vmul.f32 %v648_v43, %v648_v43 }
  0xde   : > { %v426_v45 = vpop.f32.mrf.mxu1  ;;  %444 = vst [vmem:[%s287_s26 + $0x18] sm:$0xff] %v645_v44  ;;  %v475_v55 = vmul.f32 %v645_v44, %v645_v44 }
  0xdf   : > { %445 = vst [vmem:[%s287_s26 + $0x20] sm:$0xff] %v426_v45  ;;  %v413_v46 = vpop.f32.mrf.mxu0  ;;  %v476_v58 = vmul.f32 %v426_v45, %v426_v45 }
  0xe0   : > { %v649_v47 = vpop.f32.mrf.mxu1  ;;  %442 = vst [vmem:[%s287_s26 + $0x8] sm:$0xff] %v413_v46  ;;  %v456_v49 = vadd.f32 %v413_v46, %v410_v42  ;;  %v473_v50 = vmul.f32 %v413_v46, %v413_v46 }
  0xe1   : > { %448 = vst [vmem:[%s287_s26 + $0x38] sm:$0xff] %v649_v47  ;;  %v479_v3 = vmul.f32 %v649_v47, %v649_v47 }
  0xe2   : > { %v429_v51 = vpop.f32.mrf.mxu1  ;;  %v457_v53 = vadd.f32 %v644_v41, %v456_v49  ;;  %v480_v54 = vadd.f32 %v473_v50, %v472_v48 }
  0xe3   : > { %446 = vst [vmem:[%s287_s26 + $0x28] sm:$0xff] %v429_v51  ;;  %v477_v62 = vmul.f32 %v429_v51, %v429_v51 }
  0xe4   : > { %v481_v56 = vadd.f32 %v480_v54, %v474_v52  ;;  %v458_v57 = vadd.f32 %v645_v44, %v457_v53 }
  0xe6   : > { %v459_v59 = vadd.f32 %v458_v57, %v426_v45  ;;  %v482_v60 = vadd.f32 %v481_v56, %v475_v55 }
  0xe8   : > { %v460_v61 = vadd.f32 %v459_v59, %v429_v51  ;;  %v483_v63 = vadd.f32 %v482_v60, %v476_v58 }
  0xea   : > { %v461_v1 = vadd.f32 %v648_v43, %v460_v61  ;;  %v484_v2 = vadd.f32 %v483_v63, %v477_v62 }
  0xec   : > { %v462_v4 = vadd.f32 %v649_v47, %v461_v1  ;;  %v485_v5 = vadd.f32 %v484_v2, %v478_v0 }
  0xee   : > { %v463_v6 = vrot.slane %v462_v4, 4  ;;  %v486_v7 = vadd.f32 %v485_v5, %v479_v3 }
  0xf0   : > { %v464_v8 = vadd.f32 %v463_v6, %v462_v4  ;;  %v487_v9 = vrot.slane %v486_v7, 4 }
  0xf2   : > { %v465_v10 = vrot.slane %v464_v8, 2  ;;  %v488_v11 = vadd.f32 %v487_v9, %v486_v7 }
  0xf4   : > { %v466_v12 = vadd.f32 %v465_v10, %v464_v8  ;;  %v489_v13 = vrot.slane %v488_v11, 2 }
  0xf6   : > { %v467_v14 = vrot.slane %v466_v12, 1  ;;  %v490_v15 = vadd.f32 %v489_v13, %v488_v11 }
  0xf8   : > { %v468_v17 = vadd.f32 %v467_v14, %v466_v12  ;;  %v491_v18 = vrot.slane %v490_v15, 1 }
  0xfa   : > { %v469_v20 = vadd.f32 %v468_v17, %v455_v16  ;;  %v492_v21 = vadd.f32 %v491_v18, %v490_v15 }
  0xfc   : > { %470 = vst [vmem:[%s791_s16] sm:$0x1] %v469_v20  ;;  %v493_v22 = vadd.f32 %v492_v21, %v471_v19 }
  0xfe   : > { %494 = vst [vmem:[%s796_s19] sm:$0x1] %v493_v22 }
  0xff PF: > { %s17_s23 = sadd.s32 1, %s703_s23   ;;  %s825_s21 = smov %s699_s22 }
 0x100   : > { %p14_p6 = scmp.ge.s32.totalorder %s17_s23, 4   ;;  %s826_s22 = smov %s828_s24 }
 0x102   :  { %16 = sbr.rel (!%p14_p6) target bundleno = 2 (0x2), region = 94 }

// kernel: bottleneck_forward.7
= control target key start
LH: loop header
LB: loop body
LE: loop exit
PB: predicated region body
PF: predicated region fallthrough
CT: control target
= control target key end

     0   :  { %9 = vsyncpa [#allocation3], 0  ;;  %s654_s0 = inlined_call_operand.vmem [shape: f32[128,128], index: 0, kind: input, shape index: {}]   ;;  %s655_s1 = inlined_call_operand.vmem [shape: f32[1,128], index: 1, kind: input, shape index: {}]   ;;  %s656_s2 = inlined_call_operand.vmem [shape: f32[1,128], index: 2, kind: input, shape index: {}]   ;;  %s657_s3 = inlined_call_operand.vmem [shape: f32[128,128], index: 3, kind: input, shape index: {}]   ;;  %s658_s4 = inlined_call_operand.hbm [shape: f32[128,128], index: 4, kind: output, shape index: {}]  }
   0x1   :  { %11 = vsyncpa [#allocation3 + $0x1], 0  ;;  %s527_s15 = smov 0   ;;  %s529_s16 = smov 0  }
   0x2   :  { %s531_s17 = smov 0   ;;  %s533_s18 = smov 0  }
   0x3 LB: > { %s548_s19 = sadd.s32 4294967295, %s497_s18   ;;  %s379_s20 = sadd.s32 4294967294, %s497_s18   ;;  %s497_s18 = sphi %s533_s18, %s664_s18   ;;  %s493_s17 = sphi %s531_s17, %s663_s17   ;;  %s489_s16 = sphi %s529_s16, %s662_s16   ;;  %s485_s15 = sphi %s527_s15, %s661_s15  }
   0x4   : > { %s552_s21 = sadd.s32 1, %s497_s18   ;;  %s118_s22 = sadd.s32 1, %s493_s17 }
   0x5   : > { %s115_s23 = ssub.s32 %s497_s18, %s552_s21  ;;  %p128_p0 = scmp.ne.s32.totalorder %s493_s17, %s489_s16 }
   0x6   : > { %p116_p1 = scmp.eq.s32.totalorder %s115_s23, 0  ;;  %p129_p2 = scmp.eq.s32.totalorder %s548_s19, 1 }
   0x7   : > { %p134_p3 = scmp.ne.s32.totalorder %s489_s16, %s485_s15  ;;  %p135_p4 = scmp.eq.s32.totalorder %s379_s20, 1 }
   0x8   : > { %s563_s24 = scalar_select %p116_p1, %s493_s17, %s118_s22  }
   0x9   : > { %p565_p5 = por %p129_p2, %p128_p0  ;;  %p569_p6 = por %p135_p4, %p134_p3 }
   0xa   : > { %p382_p7 = scmp.ge.s32.totalorder %s497_s18, 1  ;;  %p177_p8 = scmp.lt.s32.totalorder %s497_s18, 3 }
   0xc   : > { %p178_p9 = pnand %p382_p7, %p177_p8 }
   0xd   : > { %s384_s27 = sshll.u32 (!%p178_p9), %s548_s19, 3  ;;  %s205_s28 = sand.u32 (!%p178_p9), 1, %s489_s16  }
   0xe   : > { %181 = sbr.rel (%p178_p9) target bundleno = 50 (0x32), region = 36  ;;  %p209_p10 = scmp.lt.s32.totalorder (!%p178_p9), %s384_s27, 15 }
   0xf   : > { %s594_s14 = sshll.u32 (!%p178_p9), %s205_s28, 6  ;;  %s395_s23 = sshll.u32 (!%p178_p9), %s548_s19, 10 }
  0x10   : > { %s207_s20 = scalar_lea.vmem (!%p178_p9), [#allocation2], %s594_s14  ;;  %s610_s19 = scalar_lea.hbm (!%p178_p9), %s658_s4, %s395_s23 }
  0x11   : > { %s305_s22 = sshll.u32 (!%p178_p9), %s207_s20, 4  ;;  %s614_s30 = scalar_lea.sflag (!%p178_p9), [#allocation3], %s205_s28  ;;  %s605_s22 = int_to_ptr.vmem [resolvable:$true] %s305_s22 }
  0x12   : > { %s437_s5 = scalar_lea.vmem (!%p178_p9), %s605_s22, 1024  ;;  %s499_s6 = smov (!%p178_p9), [#allocation2]  }
  0x13   : > { %s666_s27 = smov (!%p209_p10, %s384_s27), 15  ;;  %v388_v0 = vld [vmem:[%s655_s1] ss:$0 sm:$0xff]  ;;  %p438_p11 = scmp.ne.s32.totalorder %s605_s22, %s437_s5 }
  0x14   : > { %s385_s29 = sshll.u32 %s666_s27, 3  ;;  %v389_v2 = vld [vmem:[%s656_s2] ss:$0 sm:$0xff]  ;;  %s441_s7 = sshll.u32 %s499_s6, 4  ;;  %s442_s7 = int_to_ptr.vmem [resolvable:$false] %s441_s7 }
  0x15   : > { %s212_s8 = scalar_lea.vmem %s654_s0, %s385_s29  ;;  %s586_s11 = scalar_lea.vmem %s657_s3, %s385_s29 }
  0x16   : > { %v221_v1 = vld [vmem:[%s212_s8] sm:$0xff]  ;;  %v222_v3 = vld [vmem:[%s212_s8 + $0x8] sm:$0xff]  ;;  %v223_v7 = vld [vmem:[%s212_s8 + $0x10] sm:$0xff]  ;;  %p439_p12 = pnand %p438_p11, %p565_p5  ;;  %p444_p0 = scmp.lt.s32.totalorder %s605_s22, %s442_s7 }
  0x17   : > { %v236_v4 = vmul.f32 %v388_v0, %v221_v1  ;;  %v259_v5 = vld [vmem:[%s586_s11] sm:$0xff]  ;;  %v237_v6 = vmul.f32 %v388_v0, %v222_v3  ;;  %v260_v8 = vld [vmem:[%s586_s11 + $0x8] sm:$0xff]  ;;  %v238_v9 = vmul.f32 %v388_v0, %v223_v7  ;;  %v224_v10 = vld [vmem:[%s212_s8 + $0x18] sm:$0xff] }
  0x18   : > { %v225_v11 = vld [vmem:[%s212_s8 + $0x20] sm:$0xff]  ;;  %v261_v14 = vld [vmem:[%s586_s11 + $0x10] sm:$0xff]  ;;  %v239_v15 = vmul.f32 %v388_v0, %v224_v10  ;;  %v262_v16 = vld [vmem:[%s586_s11 + $0x18] sm:$0xff]  ;;  %p440_p13 = pneg %p439_p12 }
  0x19   : > { %v251_v12 = vadd.f32 %v389_v2, %v236_v4  ;;  %v252_v13 = vadd.f32 %v389_v2, %v237_v6  ;;  %v240_v17 = vmul.f32 %v388_v0, %v225_v11  ;;  %v226_v18 = vld [vmem:[%s212_s8 + $0x28] sm:$0xff]  ;;  %v253_v19 = vadd.f32 %v389_v2, %v238_v9  ;;  %v263_v20 = vld [vmem:[%s586_s11 + $0x20] sm:$0xff]  ;;  %v227_v22 = vld [vmem:[%s212_s8 + $0x30] sm:$0xff] }
  0x1a   : > { %v241_v21 = vmul.f32 %v388_v0, %v226_v18  ;;  %v228_v23 = vld [vmem:[%s212_s8 + $0x38] sm:$0xff]  ;;  %v254_v26 = vadd.f32 %v389_v2, %v239_v15  ;;  %v264_v28 = vld [vmem:[%s586_s11 + $0x28] sm:$0xff]  ;;  %v242_v31 = vmul.f32 %v388_v0, %v227_v22  ;;  %v265_v37 = vld [vmem:[%s586_s11 + $0x30] sm:$0xff]  ;;  %s443_s8 = scalar_lea.vmem %s442_s7, 2048 }
  0x1b   : > { %v267_v24 = vadd.f32 %v259_v5, %v251_v12  ;;  %v268_v25 = vadd.f32 %v260_v8, %v252_v13  ;;  %v255_v27 = vadd.f32 %v389_v2, %v240_v17  ;;  %v269_v29 = vadd.f32 %v261_v14, %v253_v19  ;;  %v266_v38 = vld [vmem:[%s586_s11 + $0x38] sm:$0xff]  ;;  %p445_p1 = scmp.lt.s32.totalorder %s443_s8, %s437_s5 }
  0x1c   : > { %v256_v30 = vadd.f32 %v389_v2, %v241_v21  ;;  %v243_v32 = vmul.f32 %v388_v0, %v228_v23  ;;  %v270_v35 = vadd.f32 %v262_v16, %v254_v26  ;;  %v257_v41 = vadd.f32 %v389_v2, %v242_v31 }
  0x1d   : > { %v275_v33 = vmax.f32 %v267_v24, 0.0  ;;  %v276_v34 = vmax.f32 %v268_v25, 0.0  ;;  %v271_v36 = vadd.f32 %v263_v20, %v255_v27  ;;  %v277_v39 = vmax.f32 %v269_v29, 0.0  ;;  %p446_p2 = por %p445_p1, %p444_p0 }
  0x1e   : > { %v272_v40 = vadd.f32 %v264_v28, %v256_v30  ;;  %v258_v42 = vadd.f32 %v389_v2, %v243_v32  ;;  %v278_v43 = vmax.f32 %v270_v35, 0.0  ;;  %v273_v46 = vadd.f32 %v265_v37, %v257_v41 }
  0x1f   : > { %283 = vst [vmem:[%s207_s20] sm:$0xff] %v275_v33  ;;  %284 = vst [vmem:[%s207_s20 + $0x8] sm:$0xff] %v276_v34  ;;  %v279_v44 = vmax.f32 %v271_v36, 0.0  ;;  %p447_p3 = pnand %p446_p2, %p440_p13 }
  0x20   : > { %285 = vst [vmem:[%s207_s20 + $0x10] sm:$0xff] %v277_v39  ;;  %v280_v45 = vmax.f32 %v272_v40, 0.0  ;;  %v274_v47 = vadd.f32 %v266_v38, %v258_v42  ;;  %286 = vst [vmem:[%s207_s20 + $0x18] sm:$0xff] %v278_v43  ;;  %v281_v48 = vmax.f32 %v273_v46, 0.0 }
  0x21   : > { %287 = vst [vmem:[%s207_s20 + $0x20] sm:$0xff] %v279_v44 }
  0x22   : > { %288 = vst [vmem:[%s207_s20 + $0x28] sm:$0xff] %v280_v45  ;;  %v282_v49 = vmax.f32 %v274_v47, 0.0  ;;  %289 = vst [vmem:[%s207_s20 + $0x30] sm:$0xff] %v281_v48 }
  0x24   : > { %290 = vst [vmem:[%s207_s20 + $0x38] sm:$0xff] %v282_v49 }
  0x25   : > { %450 = shalt.err (!%p447_p3)
}
  0x26   : > { %s451_s28 = scalar_lea.hbm %s610_s19, 1024  ;;  %s455_s11 = scalar_lea.hbm %s658_s4, 2048 }
  0x27   : > { %p452_p4 = scmp.ne.s32.totalorder %s610_s19, %s451_s28  ;;  %p456_p9 = scmp.lt.s32.totalorder %s610_s19, %s658_s4 }
  0x28   : > { %p457_p10 = scmp.lt.s32.totalorder %s455_s11, %s451_s28 }
  0x29   : > { %p453_p7 = pnand %p452_p4, %p565_p5 }
  0x2a   : > { %p458_p11 = por %p457_p10, %p456_p9 }
  0x2b   : > { %p454_p8 = pneg %p453_p7 }
  0x2d   : > { %p459_p12 = pnand %p458_p11, %p454_p8 }
  0x2f   : > { %462 = shalt.err (!%p459_p12)
}
  0x30   : > { %s500_s14 = smov 128   ;;  %s501_s20 = smov 8  }
  0x31   : > { %396 = dma.vmem_to_hbm [thread:$0]  (%p565_p5), %s605_s22, 1024, %s610_s19, %s614_s30, %s500_s14, %s500_s14, %s501_s20  }
  0x32 PF: > { %p402_p13 = scmp.ge.s32.totalorder %s497_s18, 2  ;;  %s320_s23 = sand.u32 1, %s485_s15  }
  0x33   : > { %s321_s27 = scalar_lea.sflag [#allocation3], %s320_s23 }
  0x34   : > { %p399_p0 = pnand %p402_p13, %p569_p6 }
  0x36   : > { %p400_p1 = pneg %p399_p0 }
  0x38   : > { %480 = dma.done.wait (%p400_p1), %s321_s27, 1024  }
  0x39   : > { %482 = vsyncadd (%p400_p1), %s321_s27, 4294966272  ;;  %p14_p2 = scmp.ge.s32.totalorder %s552_s21, 4   ;;  %s661_s15 = smov %s489_s16 }
  0x3a   : > { %s662_s16 = smov %s493_s17  ;;  %s663_s17 = smov %s563_s24 }
  0x3b   : > { %s664_s18 = smov %s552_s21  ;;  %16 = sbr.rel (!%p14_p2) target bundleno = 3 (0x3), region = 74 }
  0x40   :  { %326 = vsyncpa [#allocation3], 1 }
  0x41   :  { %328 = vsyncpa [#allocation3 + $0x1], 1 }

// kernel: bottleneck_forward.5
= control target key start
LH: loop header
LB: loop body
LE: loop exit
PB: predicated region body
PF: predicated region fallthrough
CT: control target
= control target key end

     0   :  { %s1947_s21 = smov 0   ;;  %s1949_s22 = smov 0   ;;  %s2327_s0 = inlined_call_operand.vmem [shape: f32[2,8,8,32], index: 0, kind: input, shape index: {}]   ;;  %s2328_s1 = inlined_call_operand.vmem [shape: f32[1,32], index: 1, kind: input, shape index: {}]   ;;  %s2329_s2 = inlined_call_operand.vmem [shape: f32[1,32], index: 2, kind: input, shape index: {}]   ;;  %s2330_s3 = inlined_call_operand.vmem [shape: bf16[3,3,32,32], index: 3, kind: input, shape index: {}]   ;;  %s2331_s4 = inlined_call_operand.vmem [shape: f32[2,8,8,32], index: 4, kind: output, shape index: {0}]   ;;  %s2332_s5 = inlined_call_operand.vmem [shape: f32[2,1,32], index: 5, kind: output, shape index: {1}]   ;;  %s2333_s6 = inlined_call_operand.vmem [shape: f32[2,1,32], index: 6, kind: output, shape index: {2}]  }
   0x1   :  { %s1951_s23 = smov 0  }
   0x2 LB: > { %s29_s24 = sadd.s32 1, %s1905_s22  ;;  %p1581_p0 = scmp.ge.s32.totalorder %s1909_s23, 1  ;;  %s1909_s23 = sphi %s1951_s23, %s17_s23   ;;  %s1905_s22 = sphi %s1949_s22, %s2335_s22   ;;  %s1901_s21 = sphi %s1947_s21, %s2334_s21  }
   0x3   : > { %p31_p1 = scmp.ge.s32.totalorder %s29_s24, 2  ;;  %p235_p2 = scmp.lt.s32.totalorder %s1909_s23, 3 }
   0x5   : > { %s2337_s24 = smov (%p31_p1, %s29_s24), 0  ;;  %p236_p3 = pnand %p1581_p0, %p235_p2 }
   0x6   : > { %p274_p4 = scmp.lt.s32.totalorder (!%p236_p3), %s1901_s21, 1 }
   0x7   : > { %239 = sbr.rel (%p236_p3) target bundleno = 328 (0x148), region = 36 }
   0xc   : > { %v1869_v0 = vld [vmem:[%s2330_s3 + $0x18] sm:$0xff]   ;;  %v1870_v1 = vld [vmem:[%s2330_s3 + $0x10] sm:$0xff]   ;;  %vm344_vm0 = vcmask 261120   ;;  %s2339_s21 = smov (!%p274_p4, %s1901_s21), 1  ;;  %v1976_v2 = vld [vmem:[%s2328_s1] ss:$0 sm:$0xff] }
   0xd   : > { %1840 = vmatprep.subr.bf16.mxu1 %v1869_v0  ;;  %1732 = vmatprep.subr.bf16.mxu0 %v1869_v0  ;;  %v1911_v3 = vmov 0.0   ;;  %vm346_vm1 = vcmask 254976   ;;  %v1985_v4 = vld [vmem:[%s2330_s3 + $0x8] sm:$0xff]   ;;  %s1676_s9 = sshll.u32 %s2339_s21, 6  ;;  %v1991_v5 = vld [vmem:[%s2329_s2] ss:$0 sm:$0xff]  ;;  %s2241_s8 = scalar_lea.vmem %s2332_s5, %s2339_s21 }
   0xe   : > { %1842 = vmatpush3.bf16.msra.mxu1 %v1869_v0  ;;  %1733 = vmatpush3.bf16.msra.mxu0 %v1869_v0  ;;  %345 = vst.msk [vmem:[#allocation2] sm:$0xff] %vm344_vm0, %v1911_v3  ;;  %349 = vst.msk [vmem:[#allocation2 + $0x90] sm:$0xff] %vm344_vm0, %v1911_v3  ;;  %v1998_v6 = vld [vmem:[%s2330_s3 + $0x28] sm:$0xff]   ;;  %s2005_s16 = scalar_lea.vmem %s2327_s0, %s1676_s9  ;;  %vm352_vm2 = vcmask 253952   ;;  %v1874_v43 = vld [vmem:[%s2330_s3 + $0x20] sm:$0xff]   ;;  %s2247_s12 = scalar_lea.vmem %s2333_s6, %s2339_s21 }
   0xf   : > { %1841 = vmatprep.subr.bf16.mxu1 %v1870_v1  ;;  %1734 = vmatprep.subr.bf16.mxu0 %v1870_v1  ;;  %347 = vst.msk [vmem:[#allocation2 + $0x8] sm:$0x3] %vm346_vm1, %v1911_v3  ;;  %350 = vst.msk [vmem:[#allocation2 + $0x98] sm:$0x3] %vm346_vm1, %v1911_v3  ;;  %v294_v7 = vld [vmem:[%s2005_s16] sm:$0xff]  ;;  %v297_v8 = vld [vmem:[%s2005_s16 + $0x18] sm:$0xff]  ;;  %s2276_s15 = scalar_lea.vmem %s2331_s4, %s1676_s9 }
  0x10   : > { %v298_v9 = vld [vmem:[%s2005_s16 + $0x20] sm:$0xff]  ;;  %353 = vst.msk [vmem:[#allocation2 + $0x10] sm:$0x1] %vm352_vm2, %v1911_v3  ;;  %354 = vst.msk [vmem:[#allocation2 + $0x20] sm:$0x1] %vm352_vm2, %v1911_v3  ;;  %v309_v10 = vmul.f32 %v1976_v2, %v294_v7  ;;  %v312_v11 = vmul.f32 %v1976_v2, %v297_v8  ;;  %v295_v13 = vld [vmem:[%s2005_s16 + $0x8] sm:$0xff] }
  0x11   : > { %355 = vst.msk [vmem:[#allocation2 + $0x30] sm:$0x1] %vm352_vm2, %v1911_v3  ;;  %356 = vst.msk [vmem:[#allocation2 + $0x40] sm:$0x1] %vm352_vm2, %v1911_v3  ;;  %v313_v12 = vmul.f32 %v1976_v2, %v298_v9  ;;  %v296_v14 = vld [vmem:[%s2005_s16 + $0x10] sm:$0xff]  ;;  %v299_v15 = vld [vmem:[%s2005_s16 + $0x28] sm:$0xff]  ;;  %v310_v16 = vmul.f32 %v1976_v2, %v295_v13 }
  0x12   : > { %357 = vst.msk [vmem:[#allocation2 + $0x50] sm:$0x1] %vm352_vm2, %v1911_v3  ;;  %358 = vst.msk [vmem:[#allocation2 + $0x60] sm:$0x1] %vm352_vm2, %v1911_v3  ;;  %1843 = vmatpush3.bf16.msra.mxu1 %v1870_v1  ;;  %1735 = vmatpush3.bf16.msra.mxu0 %v1870_v1  ;;  %v311_v17 = vmul.f32 %v1976_v2, %v296_v14  ;;  %v300_v18 = vld [vmem:[%s2005_s16 + $0x30] sm:$0xff]  ;;  %v314_v19 = vmul.f32 %v1976_v2, %v299_v15  ;;  %v301_v35 = vld [vmem:[%s2005_s16 + $0x38] sm:$0xff] }
  0x13   : > { %359 = vst.msk [vmem:[#allocation2 + $0x70] sm:$0x1] %vm352_vm2, %v1911_v3  ;;  %360 = vst.msk [vmem:[#allocation2 + $0x80] sm:$0x1] %vm352_vm2, %v1911_v3  ;;  %1744 = vmatprep.subr.bf16.mxu1 %v1985_v4  ;;  %1756 = vmatprep.subr.bf16.mxu0 %v1998_v6  ;;  %v324_v20 = vadd.f32 %v1991_v5, %v309_v10  ;;  %v327_v21 = vadd.f32 %v1991_v5, %v312_v11  ;;  %v1873_v55 = vld [vmem:[%s2330_s3] sm:$0xff]   ;;  %v1876_v59 = vld [vmem:[%s2330_s3 + $0x48] sm:$0xff]  }
  0x14   : > { %361 = vst.msk [vmem:[#allocation2 + $0x19] sm:$0x1] %vm352_vm2, %v1911_v3  ;;  %362 = vst.msk [vmem:[#allocation2 + $0x29] sm:$0x1] %vm352_vm2, %v1911_v3  ;;  %v328_v22 = vadd.f32 %v1991_v5, %v313_v12  ;;  %v315_v23 = vmul.f32 %v1976_v2, %v300_v18  ;;  %v325_v24 = vadd.f32 %v1991_v5, %v310_v16  ;;  %v1875_v60 = vld [vmem:[%s2330_s3 + $0x38] sm:$0xff]   ;;  %v1877_v10 = vld [vmem:[%s2330_s3 + $0x30] sm:$0xff]  }
  0x15   : > { %363 = vst.msk [vmem:[#allocation2 + $0x39] sm:$0x1] %vm352_vm2, %v1911_v3  ;;  %364 = vst.msk [vmem:[#allocation2 + $0x49] sm:$0x1] %vm352_vm2, %v1911_v3  ;;  %v326_v25 = vadd.f32 %v1991_v5, %v311_v17  ;;  %v329_v26 = vadd.f32 %v1991_v5, %v314_v19  ;;  %v332_v27 = vmax.f32 %v324_v20, 0.0  ;;  %v335_v28 = vmax.f32 %v327_v21, 0.0 }
  0x16   : > { %365 = vst.msk [vmem:[#allocation2 + $0x59] sm:$0x1] %vm352_vm2, %v1911_v3  ;;  %366 = vst.msk [vmem:[#allocation2 + $0x69] sm:$0x1] %vm352_vm2, %v1911_v3  ;;  %v336_v29 = vmax.f32 %v328_v22, 0.0  ;;  %v330_v30 = vadd.f32 %v1991_v5, %v315_v23  ;;  %v333_v31 = vmax.f32 %v325_v24, 0.0  ;;  %v316_v38 = vmul.f32 %v1976_v2, %v301_v35 }
  0x17   : > { %367 = vst.msk [vmem:[#allocation2 + $0x79] sm:$0x1] %vm352_vm2, %v1911_v3  ;;  %368 = vst.msk [vmem:[#allocation2 + $0x89] sm:$0x1] %vm352_vm2, %v1911_v3  ;;  %v334_v32 = vmax.f32 %v326_v25, 0.0  ;;  %v337_v33 = vmax.f32 %v329_v26, 0.0 }
  0x18   : > { %371 = vst.msk [vmem:[#allocation2 + $0x11] sm:$0xff] %vm344_vm0, %v332_v27  ;;  %374 = vst.msk [vmem:[#allocation2 + $0x41] sm:$0xff] %vm344_vm0, %v335_v28  ;;  %v338_v34 = vmax.f32 %v330_v30, 0.0  ;;  %v395_v36 = vld [vmem:[#allocation2 + $0x1] sm:$0xff]  ;;  %v331_v44 = vadd.f32 %v1991_v5, %v316_v38  ;;  %v1879_v17 = vld [vmem:[%s2330_s3 + $0x58] sm:$0xff]  }
  0x19   : > { %375 = vst.msk [vmem:[#allocation2 + $0x51] sm:$0xff] %vm344_vm0, %v336_v29  ;;  %372 = vst.msk [vmem:[#allocation2 + $0x21] sm:$0xff] %vm344_vm0, %v333_v31  ;;  %v379_v37 = vld [vmem:[#allocation2] sm:$0xff]  ;;  %v1880_v16 = vld [vmem:[%s2330_s3 + $0x68] sm:$0xff]  }
  0x1a   : > { %373 = vst.msk [vmem:[#allocation2 + $0x31] sm:$0xff] %vm344_vm0, %v334_v32  ;;  %376 = vst.msk [vmem:[#allocation2 + $0x61] sm:$0xff] %vm344_vm0, %v337_v33  ;;  %v590_v39 = vld [vmem:[#allocation2 + $0x2] sm:$0xff]  ;;  %v339_v57 = vmax.f32 %v331_v44, 0.0  ;;  %v1881_v26 = vld [vmem:[%s2330_s3 + $0x50] sm:$0xff]  }
  0x1b   : > { %377 = vst.msk [vmem:[#allocation2 + $0x71] sm:$0xff] %vm344_vm0, %v338_v34  ;;  %v1878_v11 = vld [vmem:[%s2330_s3 + $0x40] sm:$0xff]   ;;  %v1884_v30 = vld [vmem:[%s2330_s3 + $0x88] sm:$0xff]   ;;  %v1883_v31 = vld [vmem:[%s2330_s3 + $0x78] sm:$0xff]  }
  0x1c   : > { %378 = vst.msk [vmem:[#allocation2 + $0x81] sm:$0xff] %vm344_vm0, %v339_v57  ;;  %v1882_v27 = vld [vmem:[%s2330_s3 + $0x60] sm:$0xff]   ;;  %v1168_v44 = vld [vmem:[#allocation2 + $0x91] sm:$0xff] }
  0x1d   : > { %v1886_v38 = vld [vmem:[%s2330_s3 + $0x80] sm:$0xff]   ;;  %1401 = vst.msk [vmem:[%s2241_s8] sm:$0x1] %vm352_vm2, %v1911_v3  ;;  %1402 = vst.msk [vmem:[%s2247_s12] sm:$0x1] %vm352_vm2, %v1911_v3 }
  0x1f   : > { %v2071_v40 = vld [vmem:[#allocation2 + $0x11] sm:$0xff]  ;;  %v2073_v41 = vld [vmem:[#allocation2 + $0x41] sm:$0xff] }
  0x20   : > { %v2075_v42 = vld [vmem:[#allocation2 + $0x51] sm:$0xff]  ;;  %v403_v45 = vpack.c.bf16 %v2071_v40, %v395_v36  ;;  %v2086_v47 = vld [vmem:[#allocation2 + $0x21] sm:$0xff] }
  0x21   : > { %v2084_v46 = vpack.c.bf16 %v2075_v42, %v2073_v41  ;;  %v2088_v48 = vld [vmem:[#allocation2 + $0x31] sm:$0xff]  ;;  %v2090_v49 = vld [vmem:[#allocation2 + $0x61] sm:$0xff]  ;;  %v826_v20 = vpack.c.bf16 %v2086_v47, %v2071_v40 }
  0x22   : > { %v2094_v50 = vpack.c.bf16 %v2088_v48, %v2086_v47  ;;  %v2096_v51 = vld [vmem:[#allocation2 + $0x71] sm:$0xff]  ;;  %1736 = vmatprep.mubr.msk.bf16.mxu0 %vm344_vm0, %v403_v45  ;;  %v381_v61 = vld [vmem:[#allocation2 + $0x20] sm:$0xff]  ;;  %v827_v22 = vpack.c.bf16 %v2073_v41, %v2088_v48  ;;  %v828_v25 = vpack.c.bf16 %v2090_v49, %v2075_v42 }
  0x23   : > { %v2098_v52 = vld [vmem:[#allocation2 + $0x10] sm:$0xff]  ;;  %1740 = vmatprep.mubr.msk.bf16.mxu1 %vm344_vm0, %v2084_v46  ;;  %v2107_v54 = vpack.c.bf16 %v2096_v51, %v2090_v49  ;;  %v2125_v62 = vld [vmem:[#allocation2 + $0x22] sm:$0xff] }
  0x24   : > { %v2100_v53 = vld [vmem:[#allocation2 + $0x12] sm:$0xff]  ;;  %v387_v56 = vpack.c.bf16 %v2098_v52, %v379_v37  ;;  %1737 = vmatmul.mubr.msk.bf16.vlgmr.msra.gmra.mxu0 %vm344_vm0, %v2094_v50  ;;  %v383_v1 = vld [vmem:[#allocation2 + $0x40] sm:$0xff]  ;;  %v712_v21 = vpack.c.bf16 %v381_v61, %v2098_v52 }
  0x25   : > { %v598_v58 = vpack.c.bf16 %v2100_v53, %v590_v39  ;;  %1741 = vmatmul.mubr.msk.bf16.vlgmr.msra.gmra.mxu1 %vm344_vm0, %v2107_v54  ;;  %1757 = vmatpush3.bf16.msra.mxu0 %v1998_v6  ;;  %v2127_v63 = vld [vmem:[#allocation2 + $0x32] sm:$0xff]  ;;  %v2132_v5 = vld [vmem:[#allocation2 + $0x42] sm:$0xff]  ;;  %v940_v34 = vpack.c.bf16 %v2125_v62, %v2100_v53 }
  0x26   : > { %1745 = vmatpush3.bf16.msra.mxu1 %v1985_v4  ;;  %1758 = vmatprep.subr.bf16.mxu0 %v1874_v43  ;;  %v382_v0 = vld [vmem:[#allocation2 + $0x30] sm:$0xff]  ;;  %v2137_v6 = vpack.c.bf16 %v2127_v63, %v2125_v62  ;;  %v596_v12 = vld [vmem:[#allocation2 + $0x62] sm:$0xff]  ;;  %v941_v35 = vpack.c.bf16 %v2132_v5, %v2127_v63 }
  0x27   : > { %v384_v2 = vld [vmem:[#allocation2 + $0x50] sm:$0xff]  ;;  %1746 = vmatprep.subr.bf16.mxu1 %v1873_v55  ;;  %1748 = vmatprep.mubr.msk.bf16.mxu1 %vm344_vm0, %v387_v56  ;;  %v388_v8 = vpack.c.bf16 %v382_v0, %v381_v61  ;;  %v385_v14 = vld [vmem:[#allocation2 + $0x60] sm:$0xff]  ;;  %v713_v23 = vpack.c.bf16 %v383_v1, %v382_v0 }
  0x28   : > { %1760 = vmatprep.mubr.msk.bf16.mxu0 %vm344_vm0, %v598_v58  ;;  %v2139_v7 = vld [vmem:[#allocation2 + $0x52] sm:$0xff]  ;;  %v2141_v4 = vpack.c.bf16 %v384_v2, %v383_v1  ;;  %v714_v24 = vpack.c.bf16 %v385_v14, %v384_v2  ;;  %v825_v28 = vld [vmem:[#allocation2 + $0x81] sm:$0xff] }
  0x29   : > { %1759 = vmatpush3.bf16.msra.mxu0 %v1874_v43  ;;  %v2145_v9 = vpack.c.bf16 %v2139_v7, %v2132_v5  ;;  %v2156_v13 = vld [vmem:[#allocation2 + $0x72] sm:$0xff]  ;;  %v711_v29 = vld [vmem:[#allocation2 + $0x80] sm:$0xff]  ;;  %v829_v32 = vpack.c.bf16 %v825_v28, %v2096_v51  ;;  %v942_v36 = vpack.c.bf16 %v596_v12, %v2139_v7  ;;  %v1172_v47 = vpack.c.bf16 %v1168_v44, %v825_v28 }
  0x2a   : > { %1747 = vmatpush3.bf16.msra.mxu1 %v1873_v55  ;;  %1780 = vmatprep.subr.bf16.mxu0 %v1876_v59  ;;  %v386_v15 = vld [vmem:[#allocation2 + $0x70] sm:$0xff]  ;;  %v2169_v18 = vpack.c.bf16 %v2156_v13, %v596_v12  ;;  %v939_v40 = vld [vmem:[#allocation2 + $0x82] sm:$0xff] }
  0x2b   : > { %1768 = vmatprep.subr.bf16.mxu1 %v1875_v60  ;;  %v390_v19 = vpack.c.bf16 %v386_v15, %v385_v14  ;;  %v715_v33 = vpack.c.bf16 %v711_v29, %v386_v15  ;;  %v1885_v37 = vld [vmem:[%s2330_s3 + $0x70] sm:$0xff]   ;;  %v943_v42 = vpack.c.bf16 %v939_v40, %v2156_v13 }
  0x2c   : > { %1761 = vmatmul.mubr.msk.bf16.vlgmr.msra.gmra.mxu0 %vm344_vm0, %v2137_v6  ;;  %v1054_v39 = vld [vmem:[#allocation2 + $0x90] sm:$0xff] }
  0x2d   : > { %1749 = vmatmul.mubr.msk.bf16.vlgmr.msra.gmra.mxu1 %vm344_vm0, %v388_v8  ;;  %1781 = vmatpush3.bf16.msra.mxu0 %v1876_v59  ;;  %v1058_v41 = vpack.c.bf16 %v1054_v39, %v711_v29  ;;  %v1282_v43 = vld [vmem:[#allocation2 + $0x92] sm:$0xff] }
  0x2e   : > { %1769 = vmatpush3.bf16.msra.mxu1 %v1875_v60  ;;  %1752 = vmatprep.mubr.msk.bf16.mxu1 %vm344_vm0, %v2141_v4  ;;  %v1286_v45 = vpack.c.bf16 %v1282_v43, %v939_v40 }
  0x2f   : > { %1764 = vmatprep.mubr.msk.bf16.mxu0 %vm344_vm0, %v2145_v9  ;;  %1770 = vmatprep.subr.bf16.mxu1 %v1877_v10 }
  0x30   : > { %1782 = vmatprep.subr.bf16.mxu0 %v1878_v11 }
  0x31   : > { %1783 = vmatpush3.bf16.msra.mxu0 %v1878_v11 }
  0x32   : > { %1771 = vmatpush3.bf16.msra.mxu1 %v1877_v10  ;;  %1804 = vmatprep.subr.bf16.mxu0 %v1880_v16 }
  0x33   : > { %1792 = vmatprep.subr.bf16.mxu1 %v1879_v17 }
  0x34   : > { %1765 = vmatmul.mubr.msk.bf16.gmra.mxu0 %vm344_vm0, %v2169_v18 }
  0x35   : > { %1753 = vmatmul.mubr.msk.bf16.gmra.mxu1 %vm344_vm0, %v390_v19  ;;  %1784 = vmatprep.mubr.msk.bf16.mxu0 %vm344_vm0, %v826_v20 }
  0x36   : > { %1772 = vmatprep.mubr.msk.bf16.mxu1 %vm344_vm0, %v712_v21 }
  0x3c   : > { %1785 = vmatmul.mubr.msk.bf16.vlgmr.msra.gmra.mxu0 %vm344_vm0, %v827_v22 }
  0x3d   : > { %1773 = vmatmul.mubr.msk.bf16.vlgmr.msra.gmra.mxu1 %vm344_vm0, %v713_v23  ;;  %1805 = vmatpush3.bf16.msra.mxu0 %v1880_v16 }
  0x3e   : > { %1793 = vmatpush3.bf16.msra.mxu1 %v1879_v17  ;;  %1776 = vmatprep.mubr.msk.bf16.mxu1 %vm344_vm0, %v714_v24 }
  0x3f   : > { %1788 = vmatprep.mubr.msk.bf16.mxu0 %vm344_vm0, %v828_v25  ;;  %1794 = vmatprep.subr.bf16.mxu1 %v1881_v26 }
  0x40   : > { %1806 = vmatprep.subr.bf16.mxu0 %v1882_v27 }
  0x41   : > { %1807 = vmatpush3.bf16.msra.mxu0 %v1882_v27 }
  0x42   : > { %1795 = vmatpush3.bf16.msra.mxu1 %v1881_v26  ;;  %1828 = vmatprep.subr.bf16.mxu0 %v1884_v30 }
  0x43   : > { %1816 = vmatprep.subr.bf16.mxu1 %v1883_v31 }
  0x44   : > { %1789 = vmatmul.mubr.msk.bf16.gmra.mxu0 %vm344_vm0, %v829_v32 }
  0x45   : > { %1777 = vmatmul.mubr.msk.bf16.gmra.mxu1 %vm344_vm0, %v715_v33  ;;  %1808 = vmatprep.mubr.msk.bf16.mxu0 %vm344_vm0, %v388_v8 }
  0x46   : > { %1796 = vmatprep.mubr.msk.bf16.mxu1 %vm344_vm0, %v940_v34 }
  0x4c   : > { %1809 = vmatmul.mubr.msk.bf16.vlgmr.msra.gmra.mxu0 %vm344_vm0, %v2141_v4 }
  0x4d   : > { %1797 = vmatmul.mubr.msk.bf16.vlgmr.msra.gmra.mxu1 %vm344_vm0, %v941_v35  ;;  %1829 = vmatpush3.bf16.msra.mxu0 %v1884_v30 }
  0x4e   : > { %1817 = vmatpush3.bf16.msra.mxu1 %v1883_v31  ;;  %1800 = vmatprep.mubr.msk.bf16.mxu1 %vm344_vm0, %v942_v36 }
  0x4f   : > { %1812 = vmatprep.mubr.msk.bf16.mxu0 %vm344_vm0, %v390_v19  ;;  %1818 = vmatprep.subr.bf16.mxu1 %v1885_v37 }
  0x50   : > { %1830 = vmatprep.subr.bf16.mxu0 %v1886_v38 }
  0x51   : > { %1831 = vmatpush3.bf16.msra.mxu0 %v1886_v38 }
  0x52   : > { %1819 = vmatpush3.bf16.msra.mxu1 %v1885_v37 }
  0x54   : > { %1813 = vmatmul.mubr.msk.bf16.gmra.mxu0 %vm344_vm0, %v1058_v41 }
  0x55   : > { %1801 = vmatmul.mubr.msk.bf16.gmra.mxu1 %vm344_vm0, %v943_v42  ;;  %1832 = vmatprep.mubr.msk.bf16.mxu0 %vm344_vm0, %v2137_v6 }
  0x56   : > { %1820 = vmatprep.mubr.msk.bf16.mxu1 %vm344_vm0, %v2094_v50 }
  0x5c   : > { %1833 = vmatmul.mubr.msk.bf16.vlgmr.msra.gmra.mxu0 %vm344_vm0, %v2145_v9 }
  0x5d   : > { %1821 = vmatmul.mubr.msk.bf16.vlgmr.msra.gmra.mxu1 %vm344_vm0, %v2084_v46  ;;  %1836 = vmatprep.mubr.msk.bf16.mxu0 %vm344_vm0, %v2169_v18 }
  0x5e   : > { %1824 = vmatprep.mubr.msk.bf16.mxu1 %vm344_vm0, %v2107_v54 }
  0x64   : > { %1837 = vmatmul.mubr.msk.bf16.gmra.mxu0 %vm344_vm0, %v1286_v45 }
  0x65   : > { %1825 = vmatmul.mubr.msk.bf16.gmra.mxu1 %vm344_vm0, %v1172_v47 }
  0xe4   : > { %v1738_v46 = vpop.f32.mrf.mxu0 }
  0xe5   : > { %v1742_v48 = vpop.f32.mrf.mxu1 }
  0xe6   : > { %v470_v49 = vpop.f32.mrf.mxu0 }
  0xe7   : > { %v486_v50 = vpop.f32.mrf.mxu1 }
  0xe8   : > { %v1739_v51 = vpop.f32.mrf.mxu0 }
  0xe9   : > { %v2255_v52 = vpop.f32.mrf.mxu1 }
  0xea   : > { %v473_v53 = vpop.f32.mrf.mxu0 }
  0xeb   : > { %v2257_v54 = vpop.f32.mrf.mxu1 }
  0xec   : > { %v1762_v55 = vpop.f32.mrf.mxu0 }
  0xed   : > { %v1750_v56 = vpop.f32.mrf.mxu1 }
  0xee   : > { %v665_v57 = vpop.f32.mrf.mxu0  ;;  %v568_v23 = vadd.f32 %v1750_v56, %v1738_v46 }
  0xef   : > { %v559_v58 = vpop.f32.mrf.mxu1 }
  0xf0   : > { %v1763_v59 = vpop.f32.mrf.mxu0  ;;  %v560_v26 = vadd.f32 %v559_v58, %v470_v49  ;;  %v698_v29 = vadd.f32 %v1762_v55, %v568_v23 }
  0xf1   : > { %v1751_v60 = vpop.f32.mrf.mxu1 }
  0xf2   : > { %v668_v61 = vpop.f32.mrf.mxu0  ;;  %v571_v30 = vadd.f32 %v1751_v60, %v1739_v51  ;;  %v696_v33 = vadd.f32 %v665_v57, %v560_v26 }
  0xf3   : > { %v562_v62 = vpop.f32.mrf.mxu1 }
  0xf4   : > { %v1766_v63 = vpop.f32.mrf.mxu0  ;;  %v563_v36 = vadd.f32 %v562_v62, %v473_v53  ;;  %v699_v38 = vadd.f32 %v1763_v59, %v571_v30 }
  0xf5   : > { %v1754_v3 = vpop.f32.mrf.mxu1 }
  0xf6   : > { %v681_v0 = vpop.f32.mrf.mxu0  ;;  %v584_v39 = vadd.f32 %v1754_v3, %v1742_v48  ;;  %v697_v46 = vadd.f32 %v668_v61, %v563_v36 }
  0xf7   : > { %v575_v1 = vpop.f32.mrf.mxu1 }
  0xf8   : > { %v2259_v2 = vpop.f32.mrf.mxu0  ;;  %v576_v42 = vadd.f32 %v575_v1, %v486_v50  ;;  %v702_v55 = vadd.f32 %v1766_v63, %v584_v39 }
  0xf9   : > { %v1755_v5 = vpop.f32.mrf.mxu1 }
  0xfa   : > { %v2261_v6 = vpop.f32.mrf.mxu0  ;;  %v700_v57 = vadd.f32 %v681_v0, %v576_v42  ;;  %v587_v60 = vadd.f32 %v1755_v5, %v2255_v52 }
  0xfb   : > { %v578_v7 = vpop.f32.mrf.mxu1 }
  0xfc   : > { %v1786_v8 = vpop.f32.mrf.mxu0  ;;  %v579_v53 = vadd.f32 %v578_v7, %v2257_v54 }
  0xfd   : > { %v1774_v4 = vpop.f32.mrf.mxu1 }
  0xfe   : > { %v893_v9 = vpop.f32.mrf.mxu0  ;;  %v812_v34 = vadd.f32 %v1774_v4, %v698_v29  ;;  %v701_v0 = vadd.f32 %v2261_v6, %v579_v53 }
  0xff   : > { %v779_v10 = vpop.f32.mrf.mxu1 }
 0x100   : > { %v1787_v11 = vpop.f32.mrf.mxu0  ;;  %v810_v40 = vadd.f32 %v779_v10, %v696_v33  ;;  %v926_v44 = vadd.f32 %v1786_v8, %v812_v34 }
 0x101   : > { %v1775_v12 = vpop.f32.mrf.mxu1 }
 0x102   : > { %v896_v13 = vpop.f32.mrf.mxu0  ;;  %v813_v45 = vadd.f32 %v1775_v12, %v699_v38  ;;  %v924_v51 = vadd.f32 %v893_v9, %v810_v40  ;;  %v703_v9 = vadd.f32 %v2259_v2, %v587_v60 }
 0x103   : > { %v782_v14 = vpop.f32.mrf.mxu1 }
 0x104   : > { %v1790_v15 = vpop.f32.mrf.mxu0  ;;  %v811_v59 = vadd.f32 %v782_v14, %v697_v46  ;;  %v927_v62 = vadd.f32 %v1787_v11, %v813_v45 }
 0x105   : > { %v1778_v16 = vpop.f32.mrf.mxu1 }
 0x106   : > { %v909_v17 = vpop.f32.mrf.mxu0  ;;  %v816_v3 = vadd.f32 %v1778_v16, %v702_v55  ;;  %v925_v12 = vadd.f32 %v896_v13, %v811_v59 }
 0x107   : > { %v795_v18 = vpop.f32.mrf.mxu1 }
 0x108   : > { %v2263_v19 = vpop.f32.mrf.mxu0  ;;  %v814_v8 = vadd.f32 %v795_v18, %v700_v57  ;;  %v930_v5 = vadd.f32 %v1790_v15, %v816_v3 }
 0x109   : > { %v1779_v20 = vpop.f32.mrf.mxu1 }
 0x10a   : > { %v2265_v21 = vpop.f32.mrf.mxu0  ;;  %v928_v11 = vadd.f32 %v909_v17, %v814_v8  ;;  %v817_v16 = vadd.f32 %v1779_v20, %v703_v9 }
 0x10b   : > { %v798_v22 = vpop.f32.mrf.mxu1 }
 0x10c   : > { %v1810_v24 = vpop.f32.mrf.mxu0  ;;  %v815_v23 = vadd.f32 %v798_v22, %v701_v0 }
 0x10d   : > { %v1798_v25 = vpop.f32.mrf.mxu1 }
 0x10e   : > { %v1122_v27 = vpop.f32.mrf.mxu0  ;;  %v1040_v56 = vadd.f32 %v1798_v25, %v926_v44 }
 0x10f   : > { %v1007_v28 = vpop.f32.mrf.mxu1 }
 0x110   : > { %v1811_v31 = vpop.f32.mrf.mxu0  ;;  %v1038_v50 = vadd.f32 %v1007_v28, %v924_v51  ;;  %v1155_v61 = vadd.f32 %v1810_v24, %v1040_v56  ;;  %v931_v28 = vadd.f32 %v2263_v19, %v817_v16 }
 0x111   : > { %v1799_v32 = vpop.f32.mrf.mxu1 }
 0x112   : > { %v1125_v35 = vpop.f32.mrf.mxu0  ;;  %v1041_v10 = vadd.f32 %v1799_v32, %v927_v62  ;;  %v1153_v54 = vadd.f32 %v1122_v27, %v1038_v50  ;;  %v929_v32 = vadd.f32 %v2265_v21, %v815_v23 }
 0x113   : > { %v1010_v37 = vpop.f32.mrf.mxu1 }
 0x114   : > { %v1814_v41 = vpop.f32.mrf.mxu0  ;;  %v1039_v25 = vadd.f32 %v1010_v37, %v925_v12  ;;  %v1156_v18 = vadd.f32 %v1811_v31, %v1041_v10 }
 0x115   : > { %v1802_v43 = vpop.f32.mrf.mxu1 }
 0x116   : > { %v1138_v47 = vpop.f32.mrf.mxu0  ;;  %v1044_v6 = vadd.f32 %v1802_v43, %v930_v5  ;;  %v1154_v29 = vadd.f32 %v1125_v35, %v1039_v25 }
 0x117   : > { %v1023_v49 = vpop.f32.mrf.mxu1 }
 0x118   : > { %v1815_v58 = vpop.f32.mrf.mxu0  ;;  %v1042_v27 = vadd.f32 %v1023_v49, %v928_v11  ;;  %v1159_v31 = vadd.f32 %v1814_v41, %v1044_v6 }
 0x119   : > { %v1803_v48 = vpop.f32.mrf.mxu1 }
 0x11a   : > { %v1141_v1 = vpop.f32.mrf.mxu0  ;;  %v1045_v36 = vadd.f32 %v1803_v48, %v931_v28  ;;  %v1157_v39 = vadd.f32 %v1138_v47, %v1042_v27 }
 0x11b   : > { %v1026_v4 = vpop.f32.mrf.mxu1 }
 0x11c   : > { %v1834_v63 = vpop.f32.mrf.mxu0  ;;  %v1043_v40 = vadd.f32 %v1026_v4, %v929_v32  ;;  %v1160_v46 = vadd.f32 %v1815_v58, %v1045_v36 }
 0x11d   : > { %v1822_v52 = vpop.f32.mrf.mxu1 }
 0x11e   : > { %v1269_v7 = vadd.f32 %v1822_v52, %v1155_v61  ;;  %v1350_v14 = vpop.f32.mrf.mxu0  ;;  %v1158_v56 = vadd.f32 %v1141_v1, %v1043_v40 }
 0x11f   : > { %v1236_v2 = vpop.f32.mrf.mxu1 }
 0x120   : > { %v1383_v13 = vadd.f32 %v1834_v63, %v1269_v7  ;;  %v1267_v15 = vadd.f32 %v1236_v2, %v1153_v54  ;;  %v1835_v24 = vpop.f32.mrf.mxu0 }
 0x121   : > { %v1823_v26 = vpop.f32.mrf.mxu1 }
 0x122   : > { %1391 = vst.msk [vmem:[%s2276_s15 + $0x10] sm:$0xff] %vm344_vm0, %v1383_v13  ;;  %v1381_v17 = vadd.f32 %v1350_v14, %v1267_v15  ;;  %v1270_v20 = vadd.f32 %v1823_v26, %v1156_v18  ;;  %v1353_v22 = vpop.f32.mrf.mxu0  ;;  %v1431_v21 = vmul.f32 %v1383_v13, %v1383_v13  ;;  %v1407_v57 = vsel %vm344_vm0, %v1383_v13, 0.0 }
 0x123   : > { %v1239_v30 = vpop.f32.mrf.mxu1 }
 0x124   : > { %1389 = vst.msk [vmem:[%s2276_s15] sm:$0xff] %vm344_vm0, %v1381_v17  ;;  %v1384_v33 = vadd.f32 %v1835_v24, %v1270_v20  ;;  %v1838_v34 = vpop.f32.mrf.mxu0  ;;  %v1268_v37 = vadd.f32 %v1239_v30, %v1154_v29  ;;  %v1429_v19 = vmul.f32 %v1381_v17, %v1381_v17  ;;  %v1404_v49 = vsel %vm344_vm0, %v1381_v17, 0.0 }
 0x125   : > { %v1826_v38 = vpop.f32.mrf.mxu1  ;;  %v1440_v8 = vsel %vm344_vm0, %v1431_v21, 0.0 }
 0x126   : > { %1392 = vst.msk [vmem:[%s2276_s15 + $0x18] sm:$0xff] %vm344_vm0, %v1384_v33  ;;  %v1273_v42 = vadd.f32 %v1826_v38, %v1159_v31  ;;  %v1366_v43 = vpop.f32.mrf.mxu0  ;;  %v1382_v35 = vadd.f32 %v1353_v22, %v1268_v37  ;;  %v1437_v48 = vsel %vm344_vm0, %v1429_v19, 0.0  ;;  %v1432_v58 = vmul.f32 %v1384_v33, %v1384_v33 }
 0x127   : > { %v1252_v44 = vpop.f32.mrf.mxu1  ;;  %v1409_v1 = vsel %vm344_vm0, %v1384_v33, 0.0 }
 0x128   : > { %v1387_v41 = vadd.f32 %v1838_v34, %v1273_v42  ;;  %v1271_v45 = vadd.f32 %v1252_v44, %v1157_v39  ;;  %1390 = vst.msk [vmem:[%s2276_s15 + $0x8] sm:$0xff] %vm344_vm0, %v1382_v35  ;;  %v1405_v55 = vsel %vm344_vm0, %v1382_v35, 0.0  ;;  %v1430_v47 = vmul.f32 %v1382_v35, %v1382_v35  ;;  %v1839_v59 = vpop.f32.mrf.mxu0  ;;  %v1403_v42 = vld [vmem:[%s2241_s8] sm:$0x1] }
 0x129   : > { %v1827_v51 = vpop.f32.mrf.mxu1  ;;  %v1406_v60 = vadd.f32 %v1405_v55, %v1404_v49  ;;  %v1442_v5 = vsel %vm344_vm0, %v1432_v58, 0.0  ;;  %v1428_v35 = vld [vmem:[%s2247_s12] sm:$0x1] }
 0x12a   : > { %1395 = vst.msk [vmem:[%s2276_s15 + $0x30] sm:$0xff] %vm344_vm0, %v1387_v41  ;;  %v1385_v53 = vadd.f32 %v1366_v43, %v1271_v45  ;;  %v1438_v62 = vsel %vm344_vm0, %v1430_v47, 0.0  ;;  %v1274_v3 = vadd.f32 %v1827_v51, %v1160_v46  ;;  %v1369_v52 = vpop.f32.mrf.mxu0  ;;  %v1435_v16 = vmul.f32 %v1387_v41, %v1387_v41 }
 0x12b   : > { %v1255_v50 = vpop.f32.mrf.mxu1  ;;  %v1408_v4 = vadd.f32 %v1407_v57, %v1406_v60  ;;  %v1439_v61 = vadd.f32 %v1438_v62, %v1437_v48  ;;  %v1415_v13 = vsel %vm344_vm0, %v1387_v41, 0.0 }
 0x12c   : > { %1393 = vst.msk [vmem:[%s2276_s15 + $0x20] sm:$0xff] %vm344_vm0, %v1385_v53  ;;  %v1433_v10 = vmul.f32 %v1385_v53, %v1385_v53  ;;  %v1388_v63 = vadd.f32 %v1839_v59, %v1274_v3  ;;  %v1272_v9 = vadd.f32 %v1255_v50, %v1158_v56  ;;  %v1411_v54 = vsel %vm344_vm0, %v1385_v53, 0.0 }
 0x12d   : > { %v1441_v0 = vadd.f32 %v1440_v8, %v1439_v61  ;;  %v1410_v12 = vadd.f32 %v1409_v1, %v1408_v4  ;;  %v1448_v17 = vsel %vm344_vm0, %v1435_v16, 0.0 }
 0x12e   : > { %1396 = vst.msk [vmem:[%s2276_s15 + $0x38] sm:$0xff] %vm344_vm0, %v1388_v63  ;;  %v1386_v7 = vadd.f32 %v1369_v52, %v1272_v9  ;;  %v1444_v23 = vsel %vm344_vm0, %v1433_v10, 0.0  ;;  %v1436_v15 = vmul.f32 %v1388_v63, %v1388_v63  ;;  %v1417_v20 = vsel %vm344_vm0, %v1388_v63, 0.0 }
 0x12f   : > { %v1412_v14 = vadd.f32 %v1411_v54, %v1410_v12  ;;  %v1443_v11 = vadd.f32 %v1442_v5, %v1441_v0 }
 0x130   : > { %1394 = vst.msk [vmem:[%s2276_s15 + $0x28] sm:$0xff] %vm344_vm0, %v1386_v7  ;;  %v1413_v25 = vsel %vm344_vm0, %v1386_v7, 0.0  ;;  %v1434_v2 = vmul.f32 %v1386_v7, %v1386_v7  ;;  %v1450_v29 = vsel %vm344_vm0, %v1436_v15, 0.0 }
 0x131   : > { %v1445_v18 = vadd.f32 %v1444_v23, %v1443_v11  ;;  %v1414_v6 = vadd.f32 %v1413_v25, %v1412_v14 }
 0x132   : > { %v1446_v24 = vsel %vm344_vm0, %v1434_v2, 0.0 }
 0x133   : > { %v1416_v26 = vadd.f32 %v1415_v13, %v1414_v6  ;;  %v1447_v27 = vadd.f32 %v1446_v24, %v1445_v18 }
 0x135   : > { %v1418_v22 = vadd.f32 %v1417_v20, %v1416_v26  ;;  %v1449_v28 = vadd.f32 %v1448_v17, %v1447_v27 }
 0x137   : > { %v1419_v30 = vrot.slane %v1418_v22, 4  ;;  %v1451_v32 = vadd.f32 %v1450_v29, %v1449_v28 }
 0x139   : > { %v1420_v31 = vadd.f32 %v1419_v30, %v1418_v22  ;;  %v1452_v33 = vrot.slane %v1451_v32, 4 }
 0x13b   : > { %v1421_v34 = vrot.slane %v1420_v31, 2  ;;  %v1453_v36 = vadd.f32 %v1452_v33, %v1451_v32 }
 0x13d   : > { %v1422_v37 = vadd.f32 %v1421_v34, %v1420_v31  ;;  %v1454_v38 = vrot.slane %v1453_v36, 2 }
 0x13f   : > { %v1423_v39 = vrot.slane %v1422_v37, 1  ;;  %v1455_v40 = vadd.f32 %v1454_v38, %v1453_v36 }
 0x141   : > { %v1424_v43 = vadd.f32 %v1423_v39, %v1422_v37  ;;  %v1456_v19 = vrot.slane %v1455_v40, 1 }
 0x143   : > { %v1425_v44 = vadd.f32 %v1424_v43, %v1403_v42  ;;  %v1457_v21 = vadd.f32 %v1456_v19, %v1455_v40 }
 0x145   : > { %1427 = vst.msk [vmem:[%s2241_s8] sm:$0x1] %vm352_vm2, %v1425_v44  ;;  %v1458_v41 = vadd.f32 %v1457_v21, %v1428_v35 }
 0x147   : > { %1459 = vst.msk [vmem:[%s2247_s12] sm:$0x1] %vm352_vm2, %v1458_v41 }
 0x148 PF: > { %s17_s23 = sadd.s32 1, %s1909_s23   ;;  %s2334_s21 = smov %s1905_s22 }
 0x149   : > { %p14_p5 = scmp.ge.s32.totalorder %s17_s23, 4   ;;  %s2335_s22 = smov %s2337_s24 }
 0x14b   :  { %16 = sbr.rel (!%p14_p5) target bundleno = 2 (0x2), region = 110 }

</bundles_post_ra>
